<compile_context>
chip_gen: v7x
topology: tpu7x:2x2x1
jax: 0.10.0
libtpu: 0.0.40
codegen_flags: <defaults>
</compile_context>

<pallas_src>
import functools

import jax
import jax.numpy as jnp
from jax import lax
from jax.experimental import pallas as pl
from jax.experimental.pallas import tpu as pltpu


def _gru_chunk_kernel(gi_ref, whh_ref, b_hn_ref, hs_ref, h_scratch,
                      *, hp, chunk, unroll):
    """Run `chunk` GRU timesteps for one time-chunk of the sequence.

    gi_ref    : (Tc, B, 3*Hp) packed input-gate pre-activations [r|z|n],
                foldable biases already added, gate blocks lane-aligned.
    whh_ref   : (Hp, 3*Hp)    packed hidden->gate weights (h @ W layout).
    b_hn_ref  : (1, Hp)       b_hh for the n gate (must stay inside r * (.)).
    hs_ref    : (Tc, B, Hp)   GRU hidden-state history for this chunk (output).
    h_scratch : (B, Hp) f32   recurrent carry across grid chunks.
    """
    c = pl.program_id(0)

    @pl.when(c == 0)
    def _():
        h_scratch[...] = jnp.zeros_like(h_scratch)

    w = whh_ref[...]                                            # (Hp, 3Hp)
    # Hoist the (1, Hp) -> (B, Hp) broadcast out of the unrolled time loop.
    b_hn = jnp.broadcast_to(b_hn_ref[...], h_scratch.shape)     # (B, Hp)

    def step(tt, h):
        # One fused MXU matmul per step: (B, Hp) @ (Hp, 3Hp) -> (B, 3Hp).
        gh = jnp.dot(h, w, preferred_element_type=jnp.float32)
        gi = gi_ref[tt]                                          # (B, 3Hp)
        # Gate slices land on 128-lane boundaries (Hp % 128 == 0).
        r = jax.nn.sigmoid(gi[:, :hp] + gh[:, :hp])
        z = jax.nn.sigmoid(gi[:, hp:2 * hp] + gh[:, hp:2 * hp])
        n = jnp.tanh(gi[:, 2 * hp:] + r * (gh[:, 2 * hp:] + b_hn))
        h_new = (1.0 - z) * n + z * h
        hs_ref[tt] = h_new.astype(hs_ref.dtype)
        return h_new

    h_fin = lax.fori_loop(0, chunk, step, h_scratch[...], unroll=unroll)
    h_scratch[...] = h_fin


def gru_prepare_forward(x, params, *, time_chunk=64):
    """x: (B, T, input_size) float32. Returns (output (B, T, O), hidden (1, B, H))."""
    B, T, I = x.shape
    H = params["w_hh"].shape[1]
    dtype = x.dtype

    # Lane-dense hidden size: pad H up to a multiple of 128 so gate slices and
    # the hs stores occupy full vregs. Padded columns stay exactly zero through
    # the recurrence (zero weights/biases -> n=0, h stays 0) and are sliced off.
    Hp = ((H + 127) // 128) * 128

    w_ih = params["w_ih"]          # (3H, I), gate order r, z, n
    w_hh = params["w_hh"]          # (3H, H)
    b_ih = params["b_ih"]          # (3H,)
    b_hh = params["b_hh"]          # (3H,)

    def pad_last(a):
        """Zero-pad the last axis from H to Hp."""
        return jnp.pad(a, [(0, 0)] * (a.ndim - 1) + [(0, Hp - H)])

    # Packed input-projection weight (I, 3*Hp): columns are [r | z | n], each
    # gate block zero-padded to Hp.
    w_ih_r, w_ih_z, w_ih_n = w_ih[:H], w_ih[H:2 * H], w_ih[2 * H:]
    w_ih_pk = jnp.concatenate(
        [pad_last(w_ih_r.T), pad_last(w_ih_z.T), pad_last(w_ih_n.T)], axis=1)

    # Packed hidden->gate weight (Hp, 3*Hp) in h @ W layout.
    def pad_hh(g):                 # g: (H, H) PyTorch (out, in) layout
        return jnp.pad(g.T, ((0, Hp - H), (0, Hp - H)))
    w_hh_pk = jnp.concatenate(
        [pad_hh(w_hh[:H]), pad_hh(w_hh[H:2 * H]), pad_hh(w_hh[2 * H:])], axis=1)

    # Fold biases: r and z gates get b_ih + b_hh; n gate keeps b_hh_n separate
    # (PyTorch: n = tanh(i_n + b_ih_n + r * (h @ W_hn^T + b_hh_n))).
    b_pk = jnp.concatenate([
        pad_last(b_ih[:H] + b_hh[:H]),
        pad_last(b_ih[H:2 * H] + b_hh[H:2 * H]),
        pad_last(b_ih[2 * H:]),
    ]).reshape(1, 1, 3 * Hp)
    b_hn = pad_last(b_hh[2 * H:]).reshape(1, Hp)

    # Hoisted input projection: ONE large matmul over all timesteps and all
    # three gates, emitted time-major (T, B, 3*Hp) directly from batch-first x.
    gi = (jnp.einsum('bti,ik->tbk', x, w_ih_pk) + b_pk).astype(jnp.float32)

    Tc = min(time_chunk, T)
    n_chunks = pl.cdiv(T, Tc)
    T_pad = n_chunks * Tc
    if T_pad != T:
        # Padded tail steps see zero gi; the carry advances into garbage there,
        # but only hs[:T] is consumed and hidden is taken from hs[T-1].
        gi = jnp.pad(gi, ((0, T_pad - T), (0, 0), (0, 0)))

    unroll = True if Tc <= 16 else 8

    # Explicit VMEM budget: double-buffered gi + hs windows, double-buffered
    # resident weights, scratch carry. Sized with 2x headroom, capped well
    # under v7x's 64 MiB physical VMEM.
    vmem_needed = (
        2 * Tc * B * 3 * Hp * 4      # gi double-buffer
        + 2 * Tc * B * Hp * 4        # hs double-buffer
        + 2 * Hp * 3 * Hp * 4        # w_hh double-buffer
        + 2 * 8 * Hp * 4             # b_hn (sublane-padded)
        + B * Hp * 4                 # h carry scratch
    )
    vmem_limit = int(min(max(2 * vmem_needed, 4 << 20), 56 << 20))

    kernel = functools.partial(_gru_chunk_kernel, hp=Hp, chunk=Tc, unroll=unroll)

    # TODO(synk): on v7x (2 TensorCores) a leading parallel batch grid axis
    # (B split across cores, per-core h carry) would use both cores; skipped
    # here because the test batch (B=2) is below one sublane tile per core.
    hs = pl.pallas_call(
        kernel,
        out_shape=jax.ShapeDtypeStruct((T_pad, B, Hp), jnp.float32),
        grid_spec=pltpu.PrefetchScalarGridSpec(
            num_scalar_prefetch=0,
            grid=(n_chunks,),
            in_specs=[
                pl.BlockSpec((Tc, B, 3 * Hp), lambda c: (c, 0, 0)),  # packed gi
                pl.BlockSpec((Hp, 3 * Hp), lambda c: (0, 0)),        # packed w_hh
                pl.BlockSpec((1, Hp), lambda c: (0, 0)),             # b_hh_n
            ],
            out_specs=pl.BlockSpec((Tc, B, Hp), lambda c: (c, 0, 0)),
            scratch_shapes=[pltpu.VMEM((B, Hp), jnp.float32)],
        ),
        compiler_params=pltpu.CompilerParams(
            # The recurrence is inherently serial over time-chunks.
            dimension_semantics=("arbitrary",),
            vmem_limit_bytes=vmem_limit,
        ),
    )(gi, w_hh_pk, b_hn)

    # Slice off time padding and lane padding; final hidden state is hs[T-1].
    hs_valid = hs[:T, :, :H]                                      # (T, B, H)

    # Deferred fc head: one big matmul over all timesteps; the transpose back
    # to batch-first is folded into the einsum output layout.
    out = jnp.einsum('tbh,oh->bto', hs_valid, params["w_fc"]) + params["b_fc"]
    out = out.astype(dtype)
    hidden = hs_valid[T - 1].astype(dtype).reshape(1, B, H)
    return out, hidden


def _reference_forward(x, params):
    """Pure-JAX reference (PyTorch nn.GRU + nn.Linear semantics) for validation."""
    B, T, I = x.shape
    H = params["w_hh"].shape[1]
    w_ih, w_hh = params["w_ih"], params["w_hh"]
    b_ih, b_hh = params["b_ih"], params["b_hh"]

    def step(h, x_t):
        gi = x_t @ w_ih.T + b_ih
        gh = h @ w_hh.T + b_hh
        i_r, i_z, i_n = gi[:, :H], gi[:, H:2 * H], gi[:, 2 * H:]
        h_r, h_z, h_n = gh[:, :H], gh[:, H:2 * H], gh[:, 2 * H:]
        r = jax.nn.sigmoid(i_r + h_r)
        z = jax.nn.sigmoid(i_z + h_z)
        n = jnp.tanh(i_n + r * h_n)
        h_new = (1.0 - z) * n + z * h
        return h_new, h_new

    h0 = jnp.zeros((B, H), x.dtype)
    h_last, hs = lax.scan(step, h0, jnp.transpose(x, (1, 0, 2)))
    gru_out = jnp.transpose(hs, (1, 0, 2))                        # (B, T, H)
    out = gru_out @ params["w_fc"].T + params["b_fc"]             # (B, T, O)
    return out, h_last.reshape(1, B, H)


def init_params(key, input_size, hidden_size, output_size):
    """Deterministic init mimicking PyTorch's uniform(-1/sqrt(H), 1/sqrt(H))."""
    ks = jax.random.split(key, 6)
    bound = 1.0 / jnp.sqrt(jnp.float32(hidden_size))
    u = lambda k, shape: jax.random.uniform(k, shape, jnp.float32, -bound, bound)
    return {
        "w_ih": u(ks[0], (3 * hidden_size, input_size)),
        "w_hh": u(ks[1], (3 * hidden_size, hidden_size)),
        "b_ih": u(ks[2], (3 * hidden_size,)),
        "b_hh": u(ks[3], (3 * hidden_size,)),
        "w_fc": u(ks[4], (output_size, hidden_size)),
        "b_fc": u(ks[5], (output_size,)),
    }


if __name__ == "__main__":
    input_size, hidden_size, output_size = 4, 32, 16
    B, T = 2, 8

    key = jax.random.PRNGKey(0)
    k_x, k_p = jax.random.split(key)
    x = jax.random.normal(k_x, (B, T, input_size), jnp.float32)
    params = init_params(k_p, input_size, hidden_size, output_size)

    fwd = jax.jit(functools.partial(gru_prepare_forward, params=params))
    out, hidden = fwd(x)
    jax.block_until_ready((out, hidden))

    ref_out, ref_hidden = _reference_forward(x, params)
    assert out.shape == (B, T, output_size)
    assert hidden.shape == (1, B, hidden_size)
    assert jnp.allclose(out, ref_out, atol=1e-5, rtol=1e-5)
    assert jnp.allclose(hidden, ref_hidden, atol=1e-5, rtol=1e-5)

    print("KERNEL_OK")
</pallas_src>

<mosaic_0001>
module attributes {stable_mosaic.version = 11 : i64} {
  func.func @_gru_chunk_kernel(%arg0: i32, %arg1: memref<8x2x384xf32, #tpu.memory_space<vmem>>, %arg2: memref<128x384xf32, #tpu.memory_space<vmem>>, %arg3: memref<1x128xf32, #tpu.memory_space<vmem>>, %arg4: memref<8x2x128xf32, #tpu.memory_space<vmem>>, %arg5: memref<2x128xf32, #tpu.memory_space<vmem>>) attributes {dimension_semantics = [#tpu.dimension_semantics<arbitrary>], iteration_bounds = array<i64: 1>, scalar_prefetch = 0 : i64, scratch_operands = 1 : i64, tpu.core_type = #tpu.core_type<tc>, window_params = [{transform_indices = @transform_0, window_bounds = array<i64: 8, 2, 384>}, {pipeline_mode = #tpu.pipeline_mode<synchronous>, transform_indices = @transform_1, window_bounds = array<i64: 128, 384>}, {pipeline_mode = #tpu.pipeline_mode<synchronous>, transform_indices = @transform_2, window_bounds = array<i64: 1, 128>}, {transform_indices = @transform_3, window_bounds = array<i64: 8, 2, 128>}]} {
    %c0_i32 = arith.constant 0 : i32
    %0 = arith.cmpi eq, %arg0, %c0_i32 : i32
    %1 = arith.extui %0 : i1 to i32
    %c0_i32_0 = arith.constant 0 : i32
    %2 = arith.cmpi ne, %1, %c0_i32_0 : i32
    scf.if %2 {
      %cst_72 = arith.constant 0.000000e+00 : f32
      %289 = vector.broadcast %cst_72 : f32 to vector<2x128xf32>
      %c0_73 = arith.constant 0 : index
      %c0_74 = arith.constant 0 : index
      %290 = vector.load %arg5[%c0_73, %c0_74] : memref<2x128xf32, #tpu.memory_space<vmem>>, vector<2x128xf32>
      tpu.vector_store %arg5[%c0_73, %c0_74], %289 {strides = array<i32>} : memref<2x128xf32, #tpu.memory_space<vmem>>, vector<2x128xf32>,
    } else {
    }
    %c0 = arith.constant 0 : index
    %c0_1 = arith.constant 0 : index
    %3 = vector.load %arg2[%c0, %c0_1] : memref<128x384xf32, #tpu.memory_space<vmem>>, vector<128x384xf32>
    %c0_2 = arith.constant 0 : index
    %c0_3 = arith.constant 0 : index
    %4 = vector.load %arg3[%c0_2, %c0_3] : memref<1x128xf32, #tpu.memory_space<vmem>>, vector<1x128xf32>
    %5 = vector.shape_cast %4 : vector<1x128xf32> to vector<1x128xf32>
    %6 = vector.broadcast %5 : vector<1x128xf32> to vector<2x128xf32>
    %c0_4 = arith.constant 0 : index
    %c0_5 = arith.constant 0 : index
    %7 = vector.load %arg5[%c0_4, %c0_5] : memref<2x128xf32, #tpu.memory_space<vmem>>, vector<2x128xf32>
    %c0_i32_6 = arith.constant 0 : i32
    %cst = arith.constant dense<0.000000e+00> : vector<2x384xf32>
    %8 = tpu.matmul %7, %3, %cst {dimension_numbers = #tpu.dot_dimension_numbers<[1], [0], [0], [1], [0, 0, 1, 1], [], []>} : vector<2x128xf32>, vector<128x384xf32>, vector<2x384xf32> -> vector<2x384xf32>
    %9 = arith.index_cast %c0_i32_6 : i32 to index
    %c0_7 = arith.constant 0 : index
    %c0_8 = arith.constant 0 : index
    %10 = vector.load %arg1[%9, %c0_7, %c0_8] : memref<8x2x384xf32, #tpu.memory_space<vmem>>, vector<1x2x384xf32>
    %11 = vector.shape_cast %10 : vector<1x2x384xf32> to vector<2x384xf32>
    %12 = vector.extract_strided_slice %11 {offsets = [0, 0], sizes = [2, 128], strides = [1, 1]} : vector<2x384xf32> to vector<2x128xf32>
    %13 = vector.extract_strided_slice %8 {offsets = [0, 0], sizes = [2, 128], strides = [1, 1]} : vector<2x384xf32> to vector<2x128xf32>
    %14 = arith.addf %12, %13 : vector<2x128xf32>
    %15 = arith.negf %14 : vector<2x128xf32>
    %16 = math.exp %15 : vector<2x128xf32>
    %cst_9 = arith.constant 1.000000e+00 : f32
    %17 = vector.broadcast %cst_9 : f32 to vector<2x128xf32>
    %18 = arith.addf %17, %16 : vector<2x128xf32>
    %19 = arith.divf %17, %18 : vector<2x128xf32>
    %20 = vector.extract_strided_slice %11 {offsets = [0, 128], sizes = [2, 128], strides = [1, 1]} : vector<2x384xf32> to vector<2x128xf32>
    %21 = vector.extract_strided_slice %8 {offsets = [0, 128], sizes = [2, 128], strides = [1, 1]} : vector<2x384xf32> to vector<2x128xf32>
    %22 = arith.addf %20, %21 : vector<2x128xf32>
    %23 = arith.negf %22 : vector<2x128xf32>
    %24 = math.exp %23 : vector<2x128xf32>
    %cst_10 = arith.constant 1.000000e+00 : f32
    %25 = vector.broadcast %cst_10 : f32 to vector<2x128xf32>
    %26 = arith.addf %25, %24 : vector<2x128xf32>
    %27 = arith.divf %25, %26 : vector<2x128xf32>
    %28 = vector.extract_strided_slice %11 {offsets = [0, 256], sizes = [2, 128], strides = [1, 1]} : vector<2x384xf32> to vector<2x128xf32>
    %29 = vector.extract_strided_slice %8 {offsets = [0, 256], sizes = [2, 128], strides = [1, 1]} : vector<2x384xf32> to vector<2x128xf32>
    %30 = arith.addf %29, %6 : vector<2x128xf32>
    %31 = arith.mulf %19, %30 : vector<2x128xf32>
    %32 = arith.addf %28, %31 : vector<2x128xf32>
    %33 = math.tanh %32 : vector<2x128xf32>
    %cst_11 = arith.constant 1.000000e+00 : f32
    %34 = vector.broadcast %cst_11 : f32 to vector<2x128xf32>
    %35 = arith.subf %34, %27 : vector<2x128xf32>
    %36 = arith.mulf %35, %33 : vector<2x128xf32>
    %37 = arith.mulf %27, %7 : vector<2x128xf32>
    %38 = arith.addf %36, %37 : vector<2x128xf32>
    %39 = arith.index_cast %c0_i32_6 : i32 to index
    %c0_12 = arith.constant 0 : index
    %c0_13 = arith.constant 0 : index
    %40 = vector.load %arg4[%39, %c0_12, %c0_13] : memref<8x2x128xf32, #tpu.memory_space<vmem>>, vector<1x2x128xf32>
    %41 = vector.shape_cast %40 : vector<1x2x128xf32> to vector<2x128xf32>
    %42 = vector.shape_cast %38 : vector<2x128xf32> to vector<1x2x128xf32>
    tpu.vector_store %arg4[%39, %c0_12, %c0_13], %42 {strides = array<i32>} : memref<8x2x128xf32, #tpu.memory_space<vmem>>, vector<1x2x128xf32>,
    %c1_i32 = arith.constant 1 : i32
    %cst_14 = arith.constant dense<0.000000e+00> : vector<2x384xf32>
    %43 = tpu.matmul %38, %3, %cst_14 {dimension_numbers = #tpu.dot_dimension_numbers<[1], [0], [0], [1], [0, 0, 1, 1], [], []>} : vector<2x128xf32>, vector<128x384xf32>, vector<2x384xf32> -> vector<2x384xf32>
    %44 = arith.index_cast %c1_i32 : i32 to index
    %c0_15 = arith.constant 0 : index
    %c0_16 = arith.constant 0 : index
    %45 = vector.load %arg1[%44, %c0_15, %c0_16] : memref<8x2x384xf32, #tpu.memory_space<vmem>>, vector<1x2x384xf32>
    %46 = vector.shape_cast %45 : vector<1x2x384xf32> to vector<2x384xf32>
    %47 = vector.extract_strided_slice %46 {offsets = [0, 0], sizes = [2, 128], strides = [1, 1]} : vector<2x384xf32> to vector<2x128xf32>
    %48 = vector.extract_strided_slice %43 {offsets = [0, 0], sizes = [2, 128], strides = [1, 1]} : vector<2x384xf32> to vector<2x128xf32>
    %49 = arith.addf %47, %48 : vector<2x128xf32>
    %50 = arith.negf %49 : vector<2x128xf32>
    %51 = math.exp %50 : vector<2x128xf32>
    %cst_17 = arith.constant 1.000000e+00 : f32
    %52 = vector.broadcast %cst_17 : f32 to vector<2x128xf32>
    %53 = arith.addf %52, %51 : vector<2x128xf32>
    %54 = arith.divf %52, %53 : vector<2x128xf32>
    %55 = vector.extract_strided_slice %46 {offsets = [0, 128], sizes = [2, 128], strides = [1, 1]} : vector<2x384xf32> to vector<2x128xf32>
    %56 = vector.extract_strided_slice %43 {offsets = [0, 128], sizes = [2, 128], strides = [1, 1]} : vector<2x384xf32> to vector<2x128xf32>
    %57 = arith.addf %55, %56 : vector<2x128xf32>
    %58 = arith.negf %57 : vector<2x128xf32>
    %59 = math.exp %58 : vector<2x128xf32>
    %cst_18 = arith.constant 1.000000e+00 : f32
    %60 = vector.broadcast %cst_18 : f32 to vector<2x128xf32>
    %61 = arith.addf %60, %59 : vector<2x128xf32>
    %62 = arith.divf %60, %61 : vector<2x128xf32>
    %63 = vector.extract_strided_slice %46 {offsets = [0, 256], sizes = [2, 128], strides = [1, 1]} : vector<2x384xf32> to vector<2x128xf32>
    %64 = vector.extract_strided_slice %43 {offsets = [0, 256], sizes = [2, 128], strides = [1, 1]} : vector<2x384xf32> to vector<2x128xf32>
    %65 = arith.addf %64, %6 : vector<2x128xf32>
    %66 = arith.mulf %54, %65 : vector<2x128xf32>
    %67 = arith.addf %63, %66 : vector<2x128xf32>
    %68 = math.tanh %67 : vector<2x128xf32>
    %cst_19 = arith.constant 1.000000e+00 : f32
    %69 = vector.broadcast %cst_19 : f32 to vector<2x128xf32>
    %70 = arith.subf %69, %62 : vector<2x128xf32>
    %71 = arith.mulf %70, %68 : vector<2x128xf32>
    %72 = arith.mulf %62, %38 : vector<2x128xf32>
    %73 = arith.addf %71, %72 : vector<2x128xf32>
    %74 = arith.index_cast %c1_i32 : i32 to index
    %c0_20 = arith.constant 0 : index
    %c0_21 = arith.constant 0 : index
    %75 = vector.load %arg4[%74, %c0_20, %c0_21] : memref<8x2x128xf32, #tpu.memory_space<vmem>>, vector<1x2x128xf32>
    %76 = vector.shape_cast %75 : vector<1x2x128xf32> to vector<2x128xf32>
    %77 = vector.shape_cast %73 : vector<2x128xf32> to vector<1x2x128xf32>
    tpu.vector_store %arg4[%74, %c0_20, %c0_21], %77 {strides = array<i32>} : memref<8x2x128xf32, #tpu.memory_space<vmem>>, vector<1x2x128xf32>,
    %c2_i32 = arith.constant 2 : i32
    %cst_22 = arith.constant dense<0.000000e+00> : vector<2x384xf32>
    %78 = tpu.matmul %73, %3, %cst_22 {dimension_numbers = #tpu.dot_dimension_numbers<[1], [0], [0], [1], [0, 0, 1, 1], [], []>} : vector<2x128xf32>, vector<128x384xf32>, vector<2x384xf32> -> vector<2x384xf32>
    %79 = arith.index_cast %c2_i32 : i32 to index
    %c0_23 = arith.constant 0 : index
    %c0_24 = arith.constant 0 : index
    %80 = vector.load %arg1[%79, %c0_23, %c0_24] : memref<8x2x384xf32, #tpu.memory_space<vmem>>, vector<1x2x384xf32>
    %81 = vector.shape_cast %80 : vector<1x2x384xf32> to vector<2x384xf32>
    %82 = vector.extract_strided_slice %81 {offsets = [0, 0], sizes = [2, 128], strides = [1, 1]} : vector<2x384xf32> to vector<2x128xf32>
    %83 = vector.extract_strided_slice %78 {offsets = [0, 0], sizes = [2, 128], strides = [1, 1]} : vector<2x384xf32> to vector<2x128xf32>
    %84 = arith.addf %82, %83 : vector<2x128xf32>
    %85 = arith.negf %84 : vector<2x128xf32>
    %86 = math.exp %85 : vector<2x128xf32>
    %cst_25 = arith.constant 1.000000e+00 : f32
    %87 = vector.broadcast %cst_25 : f32 to vector<2x128xf32>
    %88 = arith.addf %87, %86 : vector<2x128xf32>
    %89 = arith.divf %87, %88 : vector<2x128xf32>
    %90 = vector.extract_strided_slice %81 {offsets = [0, 128], sizes = [2, 128], strides = [1, 1]} : vector<2x384xf32> to vector<2x128xf32>
    %91 = vector.extract_strided_slice %78 {offsets = [0, 128], sizes = [2, 128], strides = [1, 1]} : vector<2x384xf32> to vector<2x128xf32>
    %92 = arith.addf %90, %91 : vector<2x128xf32>
    %93 = arith.negf %92 : vector<2x128xf32>
    %94 = math.exp %93 : vector<2x128xf32>
    %cst_26 = arith.constant 1.000000e+00 : f32
    %95 = vector.broadcast %cst_26 : f32 to vector<2x128xf32>
    %96 = arith.addf %95, %94 : vector<2x128xf32>
    %97 = arith.divf %95, %96 : vector<2x128xf32>
    %98 = vector.extract_strided_slice %81 {offsets = [0, 256], sizes = [2, 128], strides = [1, 1]} : vector<2x384xf32> to vector<2x128xf32>
    %99 = vector.extract_strided_slice %78 {offsets = [0, 256], sizes = [2, 128], strides = [1, 1]} : vector<2x384xf32> to vector<2x128xf32>
    %100 = arith.addf %99, %6 : vector<2x128xf32>
    %101 = arith.mulf %89, %100 : vector<2x128xf32>
    %102 = arith.addf %98, %101 : vector<2x128xf32>
    %103 = math.tanh %102 : vector<2x128xf32>
    %cst_27 = arith.constant 1.000000e+00 : f32
    %104 = vector.broadcast %cst_27 : f32 to vector<2x128xf32>
    %105 = arith.subf %104, %97 : vector<2x128xf32>
    %106 = arith.mulf %105, %103 : vector<2x128xf32>
    %107 = arith.mulf %97, %73 : vector<2x128xf32>
    %108 = arith.addf %106, %107 : vector<2x128xf32>
    %109 = arith.index_cast %c2_i32 : i32 to index
    %c0_28 = arith.constant 0 : index
    %c0_29 = arith.constant 0 : index
    %110 = vector.load %arg4[%109, %c0_28, %c0_29] : memref<8x2x128xf32, #tpu.memory_space<vmem>>, vector<1x2x128xf32>
    %111 = vector.shape_cast %110 : vector<1x2x128xf32> to vector<2x128xf32>
    %112 = vector.shape_cast %108 : vector<2x128xf32> to vector<1x2x128xf32>
    tpu.vector_store %arg4[%109, %c0_28, %c0_29], %112 {strides = array<i32>} : memref<8x2x128xf32, #tpu.memory_space<vmem>>, vector<1x2x128xf32>,
    %c3_i32 = arith.constant 3 : i32
    %cst_30 = arith.constant dense<0.000000e+00> : vector<2x384xf32>
    %113 = tpu.matmul %108, %3, %cst_30 {dimension_numbers = #tpu.dot_dimension_numbers<[1], [0], [0], [1], [0, 0, 1, 1], [], []>} : vector<2x128xf32>, vector<128x384xf32>, vector<2x384xf32> -> vector<2x384xf32>
    %114 = arith.index_cast %c3_i32 : i32 to index
    %c0_31 = arith.constant 0 : index
    %c0_32 = arith.constant 0 : index
    %115 = vector.load %arg1[%114, %c0_31, %c0_32] : memref<8x2x384xf32, #tpu.memory_space<vmem>>, vector<1x2x384xf32>
    %116 = vector.shape_cast %115 : vector<1x2x384xf32> to vector<2x384xf32>
    %117 = vector.extract_strided_slice %116 {offsets = [0, 0], sizes = [2, 128], strides = [1, 1]} : vector<2x384xf32> to vector<2x128xf32>
    %118 = vector.extract_strided_slice %113 {offsets = [0, 0], sizes = [2, 128], strides = [1, 1]} : vector<2x384xf32> to vector<2x128xf32>
    %119 = arith.addf %117, %118 : vector<2x128xf32>
    %120 = arith.negf %119 : vector<2x128xf32>
    %121 = math.exp %120 : vector<2x128xf32>
    %cst_33 = arith.constant 1.000000e+00 : f32
    %122 = vector.broadcast %cst_33 : f32 to vector<2x128xf32>
    %123 = arith.addf %122, %121 : vector<2x128xf32>
    %124 = arith.divf %122, %123 : vector<2x128xf32>
    %125 = vector.extract_strided_slice %116 {offsets = [0, 128], sizes = [2, 128], strides = [1, 1]} : vector<2x384xf32> to vector<2x128xf32>
    %126 = vector.extract_strided_slice %113 {offsets = [0, 128], sizes = [2, 128], strides = [1, 1]} : vector<2x384xf32> to vector<2x128xf32>
    %127 = arith.addf %125, %126 : vector<2x128xf32>
    %128 = arith.negf %127 : vector<2x128xf32>
    %129 = math.exp %128 : vector<2x128xf32>
    %cst_34 = arith.constant 1.000000e+00 : f32
    %130 = vector.broadcast %cst_34 : f32 to vector<2x128xf32>
    %131 = arith.addf %130, %129 : vector<2x128xf32>
    %132 = arith.divf %130, %131 : vector<2x128xf32>
    %133 = vector.extract_strided_slice %116 {offsets = [0, 256], sizes = [2, 128], strides = [1, 1]} : vector<2x384xf32> to vector<2x128xf32>
    %134 = vector.extract_strided_slice %113 {offsets = [0, 256], sizes = [2, 128], strides = [1, 1]} : vector<2x384xf32> to vector<2x128xf32>
    %135 = arith.addf %134, %6 : vector<2x128xf32>
    %136 = arith.mulf %124, %135 : vector<2x128xf32>
    %137 = arith.addf %133, %136 : vector<2x128xf32>
    %138 = math.tanh %137 : vector<2x128xf32>
    %cst_35 = arith.constant 1.000000e+00 : f32
    %139 = vector.broadcast %cst_35 : f32 to vector<2x128xf32>
    %140 = arith.subf %139, %132 : vector<2x128xf32>
    %141 = arith.mulf %140, %138 : vector<2x128xf32>
    %142 = arith.mulf %132, %108 : vector<2x128xf32>
    %143 = arith.addf %141, %142 : vector<2x128xf32>
    %144 = arith.index_cast %c3_i32 : i32 to index
    %c0_36 = arith.constant 0 : index
    %c0_37 = arith.constant 0 : index
    %145 = vector.load %arg4[%144, %c0_36, %c0_37] : memref<8x2x128xf32, #tpu.memory_space<vmem>>, vector<1x2x128xf32>
    %146 = vector.shape_cast %145 : vector<1x2x128xf32> to vector<2x128xf32>
    %147 = vector.shape_cast %143 : vector<2x128xf32> to vector<1x2x128xf32>
    tpu.vector_store %arg4[%144, %c0_36, %c0_37], %147 {strides = array<i32>} : memref<8x2x128xf32, #tpu.memory_space<vmem>>, vector<1x2x128xf32>,
    %c4_i32 = arith.constant 4 : i32
    %cst_38 = arith.constant dense<0.000000e+00> : vector<2x384xf32>
    %148 = tpu.matmul %143, %3, %cst_38 {dimension_numbers = #tpu.dot_dimension_numbers<[1], [0], [0], [1], [0, 0, 1, 1], [], []>} : vector<2x128xf32>, vector<128x384xf32>, vector<2x384xf32> -> vector<2x384xf32>
    %149 = arith.index_cast %c4_i32 : i32 to index
    %c0_39 = arith.constant 0 : index
    %c0_40 = arith.constant 0 : index
    %150 = vector.load %arg1[%149, %c0_39, %c0_40] : memref<8x2x384xf32, #tpu.memory_space<vmem>>, vector<1x2x384xf32>
    %151 = vector.shape_cast %150 : vector<1x2x384xf32> to vector<2x384xf32>
    %152 = vector.extract_strided_slice %151 {offsets = [0, 0], sizes = [2, 128], strides = [1, 1]} : vector<2x384xf32> to vector<2x128xf32>
    %153 = vector.extract_strided_slice %148 {offsets = [0, 0], sizes = [2, 128], strides = [1, 1]} : vector<2x384xf32> to vector<2x128xf32>
    %154 = arith.addf %152, %153 : vector<2x128xf32>
    %155 = arith.negf %154 : vector<2x128xf32>
    %156 = math.exp %155 : vector<2x128xf32>
    %cst_41 = arith.constant 1.000000e+00 : f32
    %157 = vector.broadcast %cst_41 : f32 to vector<2x128xf32>
    %158 = arith.addf %157, %156 : vector<2x128xf32>
    %159 = arith.divf %157, %158 : vector<2x128xf32>
    %160 = vector.extract_strided_slice %151 {offsets = [0, 128], sizes = [2, 128], strides = [1, 1]} : vector<2x384xf32> to vector<2x128xf32>
    %161 = vector.extract_strided_slice %148 {offsets = [0, 128], sizes = [2, 128], strides = [1, 1]} : vector<2x384xf32> to vector<2x128xf32>
    %162 = arith.addf %160, %161 : vector<2x128xf32>
    %163 = arith.negf %162 : vector<2x128xf32>
    %164 = math.exp %163 : vector<2x128xf32>
    %cst_42 = arith.constant 1.000000e+00 : f32
    %165 = vector.broadcast %cst_42 : f32 to vector<2x128xf32>
    %166 = arith.addf %165, %164 : vector<2x128xf32>
    %167 = arith.divf %165, %166 : vector<2x128xf32>
    %168 = vector.extract_strided_slice %151 {offsets = [0, 256], sizes = [2, 128], strides = [1, 1]} : vector<2x384xf32> to vector<2x128xf32>
    %169 = vector.extract_strided_slice %148 {offsets = [0, 256], sizes = [2, 128], strides = [1, 1]} : vector<2x384xf32> to vector<2x128xf32>
    %170 = arith.addf %169, %6 : vector<2x128xf32>
    %171 = arith.mulf %159, %170 : vector<2x128xf32>
    %172 = arith.addf %168, %171 : vector<2x128xf32>
    %173 = math.tanh %172 : vector<2x128xf32>
    %cst_43 = arith.constant 1.000000e+00 : f32
    %174 = vector.broadcast %cst_43 : f32 to vector<2x128xf32>
    %175 = arith.subf %174, %167 : vector<2x128xf32>
    %176 = arith.mulf %175, %173 : vector<2x128xf32>
    %177 = arith.mulf %167, %143 : vector<2x128xf32>
    %178 = arith.addf %176, %177 : vector<2x128xf32>
    %179 = arith.index_cast %c4_i32 : i32 to index
    %c0_44 = arith.constant 0 : index
    %c0_45 = arith.constant 0 : index
    %180 = vector.load %arg4[%179, %c0_44, %c0_45] : memref<8x2x128xf32, #tpu.memory_space<vmem>>, vector<1x2x128xf32>
    %181 = vector.shape_cast %180 : vector<1x2x128xf32> to vector<2x128xf32>
    %182 = vector.shape_cast %178 : vector<2x128xf32> to vector<1x2x128xf32>
    tpu.vector_store %arg4[%179, %c0_44, %c0_45], %182 {strides = array<i32>} : memref<8x2x128xf32, #tpu.memory_space<vmem>>, vector<1x2x128xf32>,
    %c5_i32 = arith.constant 5 : i32
    %cst_46 = arith.constant dense<0.000000e+00> : vector<2x384xf32>
    %183 = tpu.matmul %178, %3, %cst_46 {dimension_numbers = #tpu.dot_dimension_numbers<[1], [0], [0], [1], [0, 0, 1, 1], [], []>} : vector<2x128xf32>, vector<128x384xf32>, vector<2x384xf32> -> vector<2x384xf32>
    %184 = arith.index_cast %c5_i32 : i32 to index
    %c0_47 = arith.constant 0 : index
    %c0_48 = arith.constant 0 : index
    %185 = vector.load %arg1[%184, %c0_47, %c0_48] : memref<8x2x384xf32, #tpu.memory_space<vmem>>, vector<1x2x384xf32>
    %186 = vector.shape_cast %185 : vector<1x2x384xf32> to vector<2x384xf32>
    %187 = vector.extract_strided_slice %186 {offsets = [0, 0], sizes = [2, 128], strides = [1, 1]} : vector<2x384xf32> to vector<2x128xf32>
    %188 = vector.extract_strided_slice %183 {offsets = [0, 0], sizes = [2, 128], strides = [1, 1]} : vector<2x384xf32> to vector<2x128xf32>
    %189 = arith.addf %187, %188 : vector<2x128xf32>
    %190 = arith.negf %189 : vector<2x128xf32>
    %191 = math.exp %190 : vector<2x128xf32>
    %cst_49 = arith.constant 1.000000e+00 : f32
    %192 = vector.broadcast %cst_49 : f32 to vector<2x128xf32>
    %193 = arith.addf %192, %191 : vector<2x128xf32>
    %194 = arith.divf %192, %193 : vector<2x128xf32>
    %195 = vector.extract_strided_slice %186 {offsets = [0, 128], sizes = [2, 128], strides = [1, 1]} : vector<2x384xf32> to vector<2x128xf32>
    %196 = vector.extract_strided_slice %183 {offsets = [0, 128], sizes = [2, 128], strides = [1, 1]} : vector<2x384xf32> to vector<2x128xf32>
    %197 = arith.addf %195, %196 : vector<2x128xf32>
    %198 = arith.negf %197 : vector<2x128xf32>
    %199 = math.exp %198 : vector<2x128xf32>
    %cst_50 = arith.constant 1.000000e+00 : f32
    %200 = vector.broadcast %cst_50 : f32 to vector<2x128xf32>
    %201 = arith.addf %200, %199 : vector<2x128xf32>
    %202 = arith.divf %200, %201 : vector<2x128xf32>
    %203 = vector.extract_strided_slice %186 {offsets = [0, 256], sizes = [2, 128], strides = [1, 1]} : vector<2x384xf32> to vector<2x128xf32>
    %204 = vector.extract_strided_slice %183 {offsets = [0, 256], sizes = [2, 128], strides = [1, 1]} : vector<2x384xf32> to vector<2x128xf32>
    %205 = arith.addf %204, %6 : vector<2x128xf32>
    %206 = arith.mulf %194, %205 : vector<2x128xf32>
    %207 = arith.addf %203, %206 : vector<2x128xf32>
    %208 = math.tanh %207 : vector<2x128xf32>
    %cst_51 = arith.constant 1.000000e+00 : f32
    %209 = vector.broadcast %cst_51 : f32 to vector<2x128xf32>
    %210 = arith.subf %209, %202 : vector<2x128xf32>
    %211 = arith.mulf %210, %208 : vector<2x128xf32>
    %212 = arith.mulf %202, %178 : vector<2x128xf32>
    %213 = arith.addf %211, %212 : vector<2x128xf32>
    %214 = arith.index_cast %c5_i32 : i32 to index
    %c0_52 = arith.constant 0 : index
    %c0_53 = arith.constant 0 : index
    %215 = vector.load %arg4[%214, %c0_52, %c0_53] : memref<8x2x128xf32, #tpu.memory_space<vmem>>, vector<1x2x128xf32>
    %216 = vector.shape_cast %215 : vector<1x2x128xf32> to vector<2x128xf32>
    %217 = vector.shape_cast %213 : vector<2x128xf32> to vector<1x2x128xf32>
    tpu.vector_store %arg4[%214, %c0_52, %c0_53], %217 {strides = array<i32>} : memref<8x2x128xf32, #tpu.memory_space<vmem>>, vector<1x2x128xf32>,
    %c6_i32 = arith.constant 6 : i32
    %cst_54 = arith.constant dense<0.000000e+00> : vector<2x384xf32>
    %218 = tpu.matmul %213, %3, %cst_54 {dimension_numbers = #tpu.dot_dimension_numbers<[1], [0], [0], [1], [0, 0, 1, 1], [], []>} : vector<2x128xf32>, vector<128x384xf32>, vector<2x384xf32> -> vector<2x384xf32>
    %219 = arith.index_cast %c6_i32 : i32 to index
    %c0_55 = arith.constant 0 : index
    %c0_56 = arith.constant 0 : index
    %220 = vector.load %arg1[%219, %c0_55, %c0_56] : memref<8x2x384xf32, #tpu.memory_space<vmem>>, vector<1x2x384xf32>
    %221 = vector.shape_cast %220 : vector<1x2x384xf32> to vector<2x384xf32>
    %222 = vector.extract_strided_slice %221 {offsets = [0, 0], sizes = [2, 128], strides = [1, 1]} : vector<2x384xf32> to vector<2x128xf32>
    %223 = vector.extract_strided_slice %218 {offsets = [0, 0], sizes = [2, 128], strides = [1, 1]} : vector<2x384xf32> to vector<2x128xf32>
    %224 = arith.addf %222, %223 : vector<2x128xf32>
    %225 = arith.negf %224 : vector<2x128xf32>
    %226 = math.exp %225 : vector<2x128xf32>
    %cst_57 = arith.constant 1.000000e+00 : f32
    %227 = vector.broadcast %cst_57 : f32 to vector<2x128xf32>
    %228 = arith.addf %227, %226 : vector<2x128xf32>
    %229 = arith.divf %227, %228 : vector<2x128xf32>
    %230 = vector.extract_strided_slice %221 {offsets = [0, 128], sizes = [2, 128], strides = [1, 1]} : vector<2x384xf32> to vector<2x128xf32>
    %231 = vector.extract_strided_slice %218 {offsets = [0, 128], sizes = [2, 128], strides = [1, 1]} : vector<2x384xf32> to vector<2x128xf32>
    %232 = arith.addf %230, %231 : vector<2x128xf32>
    %233 = arith.negf %232 : vector<2x128xf32>
    %234 = math.exp %233 : vector<2x128xf32>
    %cst_58 = arith.constant 1.000000e+00 : f32
    %235 = vector.broadcast %cst_58 : f32 to vector<2x128xf32>
    %236 = arith.addf %235, %234 : vector<2x128xf32>
    %237 = arith.divf %235, %236 : vector<2x128xf32>
    %238 = vector.extract_strided_slice %221 {offsets = [0, 256], sizes = [2, 128], strides = [1, 1]} : vector<2x384xf32> to vector<2x128xf32>
    %239 = vector.extract_strided_slice %218 {offsets = [0, 256], sizes = [2, 128], strides = [1, 1]} : vector<2x384xf32> to vector<2x128xf32>
    %240 = arith.addf %239, %6 : vector<2x128xf32>
    %241 = arith.mulf %229, %240 : vector<2x128xf32>
    %242 = arith.addf %238, %241 : vector<2x128xf32>
    %243 = math.tanh %242 : vector<2x128xf32>
    %cst_59 = arith.constant 1.000000e+00 : f32
    %244 = vector.broadcast %cst_59 : f32 to vector<2x128xf32>
    %245 = arith.subf %244, %237 : vector<2x128xf32>
    %246 = arith.mulf %245, %243 : vector<2x128xf32>
    %247 = arith.mulf %237, %213 : vector<2x128xf32>
    %248 = arith.addf %246, %247 : vector<2x128xf32>
    %249 = arith.index_cast %c6_i32 : i32 to index
    %c0_60 = arith.constant 0 : index
    %c0_61 = arith.constant 0 : index
    %250 = vector.load %arg4[%249, %c0_60, %c0_61] : memref<8x2x128xf32, #tpu.memory_space<vmem>>, vector<1x2x128xf32>
    %251 = vector.shape_cast %250 : vector<1x2x128xf32> to vector<2x128xf32>
    %252 = vector.shape_cast %248 : vector<2x128xf32> to vector<1x2x128xf32>
    tpu.vector_store %arg4[%249, %c0_60, %c0_61], %252 {strides = array<i32>} : memref<8x2x128xf32, #tpu.memory_space<vmem>>, vector<1x2x128xf32>,
    %c7_i32 = arith.constant 7 : i32
    %cst_62 = arith.constant dense<0.000000e+00> : vector<2x384xf32>
    %253 = tpu.matmul %248, %3, %cst_62 {dimension_numbers = #tpu.dot_dimension_numbers<[1], [0], [0], [1], [0, 0, 1, 1], [], []>} : vector<2x128xf32>, vector<128x384xf32>, vector<2x384xf32> -> vector<2x384xf32>
    %254 = arith.index_cast %c7_i32 : i32 to index
    %c0_63 = arith.constant 0 : index
    %c0_64 = arith.constant 0 : index
    %255 = vector.load %arg1[%254, %c0_63, %c0_64] : memref<8x2x384xf32, #tpu.memory_space<vmem>>, vector<1x2x384xf32>
    %256 = vector.shape_cast %255 : vector<1x2x384xf32> to vector<2x384xf32>
    %257 = vector.extract_strided_slice %256 {offsets = [0, 0], sizes = [2, 128], strides = [1, 1]} : vector<2x384xf32> to vector<2x128xf32>
    %258 = vector.extract_strided_slice %253 {offsets = [0, 0], sizes = [2, 128], strides = [1, 1]} : vector<2x384xf32> to vector<2x128xf32>
    %259 = arith.addf %257, %258 : vector<2x128xf32>
    %260 = arith.negf %259 : vector<2x128xf32>
    %261 = math.exp %260 : vector<2x128xf32>
    %cst_65 = arith.constant 1.000000e+00 : f32
    %262 = vector.broadcast %cst_65 : f32 to vector<2x128xf32>
    %263 = arith.addf %262, %261 : vector<2x128xf32>
    %264 = arith.divf %262, %263 : vector<2x128xf32>
    %265 = vector.extract_strided_slice %256 {offsets = [0, 128], sizes = [2, 128], strides = [1, 1]} : vector<2x384xf32> to vector<2x128xf32>
    %266 = vector.extract_strided_slice %253 {offsets = [0, 128], sizes = [2, 128], strides = [1, 1]} : vector<2x384xf32> to vector<2x128xf32>
    %267 = arith.addf %265, %266 : vector<2x128xf32>
    %268 = arith.negf %267 : vector<2x128xf32>
    %269 = math.exp %268 : vector<2x128xf32>
    %cst_66 = arith.constant 1.000000e+00 : f32
    %270 = vector.broadcast %cst_66 : f32 to vector<2x128xf32>
    %271 = arith.addf %270, %269 : vector<2x128xf32>
    %272 = arith.divf %270, %271 : vector<2x128xf32>
    %273 = vector.extract_strided_slice %256 {offsets = [0, 256], sizes = [2, 128], strides = [1, 1]} : vector<2x384xf32> to vector<2x128xf32>
    %274 = vector.extract_strided_slice %253 {offsets = [0, 256], sizes = [2, 128], strides = [1, 1]} : vector<2x384xf32> to vector<2x128xf32>
    %275 = arith.addf %274, %6 : vector<2x128xf32>
    %276 = arith.mulf %264, %275 : vector<2x128xf32>
    %277 = arith.addf %273, %276 : vector<2x128xf32>
    %278 = math.tanh %277 : vector<2x128xf32>
    %cst_67 = arith.constant 1.000000e+00 : f32
    %279 = vector.broadcast %cst_67 : f32 to vector<2x128xf32>
    %280 = arith.subf %279, %272 : vector<2x128xf32>
    %281 = arith.mulf %280, %278 : vector<2x128xf32>
    %282 = arith.mulf %272, %248 : vector<2x128xf32>
    %283 = arith.addf %281, %282 : vector<2x128xf32>
    %284 = arith.index_cast %c7_i32 : i32 to index
    %c0_68 = arith.constant 0 : index
    %c0_69 = arith.constant 0 : index
    %285 = vector.load %arg4[%284, %c0_68, %c0_69] : memref<8x2x128xf32, #tpu.memory_space<vmem>>, vector<1x2x128xf32>
    %286 = vector.shape_cast %285 : vector<1x2x128xf32> to vector<2x128xf32>
    %287 = vector.shape_cast %283 : vector<2x128xf32> to vector<1x2x128xf32>
    tpu.vector_store %arg4[%284, %c0_68, %c0_69], %287 {strides = array<i32>} : memref<8x2x128xf32, #tpu.memory_space<vmem>>, vector<1x2x128xf32>,
    %c8_i32 = arith.constant 8 : i32
    %c0_70 = arith.constant 0 : index
    %c0_71 = arith.constant 0 : index
    %288 = vector.load %arg5[%c0_70, %c0_71] : memref<2x128xf32, #tpu.memory_space<vmem>>, vector<2x128xf32>
    tpu.vector_store %arg5[%c0_70, %c0_71], %283 {strides = array<i32>} : memref<2x128xf32, #tpu.memory_space<vmem>>, vector<2x128xf32>,
    return
  }
  func.func @transform_0(%arg0: i32) -> (i32, i32, i32) {
    %c0_i32 = arith.constant 0 : i32
    %c0_i32_0 = arith.constant 0 : i32
    %c0_i32_1 = arith.constant 0 : i32
    return %arg0, %c0_i32, %c0_i32_0 : i32, i32, i32
  }
  func.func @transform_1(%arg0: i32) -> (i32, i32) {
    %c0_i32 = arith.constant 0 : i32
    %c0_i32_0 = arith.constant 0 : i32
    %c0_i32_1 = arith.constant 0 : i32
    return %c0_i32, %c0_i32_0 : i32, i32
  }
  func.func @transform_2(%arg0: i32) -> (i32, i32) {
    %c0_i32 = arith.constant 0 : i32
    %c0_i32_0 = arith.constant 0 : i32
    %c0_i32_1 = arith.constant 0 : i32
    return %c0_i32, %c0_i32_0 : i32, i32
  }
  func.func @transform_3(%arg0: i32) -> (i32, i32, i32) {
    %c0_i32 = arith.constant 0 : i32
    %c0_i32_0 = arith.constant 0 : i32
    %c0_i32_1 = arith.constant 0 : i32
    return %arg0, %c0_i32, %c0_i32_0 : i32, i32, i32
  }
}

</mosaic_0001>

<bundles_post_ra>
// kernel: gru_prepare_forward.1
= control target key start
LH: loop header
LB: loop body
LE: loop exit
PB: predicated region body
PF: predicated region fallthrough
CT: control target
= control target key end

     0   :  { %8 = vsyncpa [#allocation4], 0  ;;  %s2474_s12 = smov [#allocation3]   ;;  %s2943_s0 = inlined_call_operand.vmem [shape: f32[8,2,384], index: 0, kind: input, shape index: {}]   ;;  %s2944_s1 = inlined_call_operand.hbm [shape: f32[128,384], index: 1, kind: input, shape index: {}]   ;;  %s2945_s2 = inlined_call_operand.vmem [shape: f32[1,128], index: 2, kind: input, shape index: {}]   ;;  %s2946_s3 = inlined_call_operand.vmem [shape: f32[8,2,128], index: 3, kind: output, shape index: {}]  }
   0x1   :  { %s16_s13 = sshll.u32 %s2474_s12, 4  ;;  %s2450_s16 = scalar_lea.hbm %s2944_s1, 6144  ;;  %s17_s13 = int_to_ptr.vmem [resolvable:$true] %s16_s13 }
   0x2   :  { %p2451_p0 = scmp.ne.s32.totalorder %s2944_s1, %s2450_s16  ;;  %p2454_p1 = scmp.lt.u32.totalorder %s2450_s16, %s2944_s1 }
   0x4   :  { %p2456_p2 = pnand %p2454_p1, %p2451_p0 }
   0x6   :  { %2459 = shalt.err (!%p2456_p2)
}
   0x7   :  { %s2460_s21 = scalar_lea.vmem %s17_s13, 6144  ;;  %p2465_p4 = scmp.lt.s32.totalorder %s17_s13, %s17_s13 }
   0x8   :  { %p2461_p3 = scmp.ne.s32.totalorder %s17_s13, %s2460_s21  ;;  %p2466_p5 = scmp.lt.s32.totalorder %s2460_s21, %s2460_s21 }
   0xa   :  { %p2467_p6 = por %p2466_p5, %p2465_p4 }
   0xc   :  { %p2468_p7 = pnand %p2467_p6, %p2461_p3 }
   0xe   :  { %2471 = shalt.err (!%p2468_p7)
}
   0xf   :  { %s2475_s22 = smov 384   ;;  %s2476_s23 = smov 24  }
  0x10   :  { %22 = dma.hbm_to_vmem [thread:$0]  %s2944_s1, 6144, %s17_s13, [#allocation4], %s2475_s22, %s2475_s22, %s2476_s23  }
  0x11   :  { %2472 = dma.done.wait [#allocation4], 6144  }
  0x12   :  { %2473 = vsyncadd [#allocation4], 4294961152  ;;  %v2477_v0 = vmov 0.0|0.0   ;;  %v2478_v1 = vmov 0.0   ;;  %vm2479_vm0 = vmmov 0   ;;  %v34_v2 = vld [vmem:[#allocation3 + $0x8] sm:$0xff] }
  0x13   :  { %1948 = vmatprep.subr.bf16.mxu1 %v2477_v0  ;;  %153 = vmatprep.mubr.f32.mxu0 %v2478_v1  ;;  %32 = vst [vmem:[#allocation2] sm:$0x3] %v2478_v1  ;;  %v37_v3 = vld [vmem:[#allocation3 + $0x20] sm:$0xff]  ;;  %v36_v6 = vld [vmem:[#allocation3 + $0x18] sm:$0xff]  ;;  %v43_v8 = vld [vmem:[#allocation3 + $0x50] sm:$0xff] }
  0x14   :  { %1668 = vmatprep.mubr.msk.f32.mxu1 %vm2479_vm0, %v2478_v1  ;;  %v33_v4 = vld [vmem:[#allocation3] sm:$0xff]  ;;  %v2517_v5 = vpack.c.bf16 %v37_v3, %v34_v2  ;;  %v40_v7 = vld [vmem:[#allocation3 + $0x38] sm:$0xff]  ;;  %v39_v11 = vld [vmem:[#allocation3 + $0x30] sm:$0xff] }
  0x15   :  { %v2519_v9 = vpack.c.bf16 %v36_v6, %v33_v4  ;;  %v2521_v10 = vpack.c.bf16 %v43_v8, %v40_v7  ;;  %v42_v12 = vld [vmem:[#allocation3 + $0x48] sm:$0xff]  ;;  %v49_v14 = vld [vmem:[#allocation3 + $0x80] sm:$0xff]  ;;  %v48_v18 = vld [vmem:[#allocation3 + $0x78] sm:$0xff] }
  0x16   :  { %v46_v13 = vld [vmem:[#allocation3 + $0x68] sm:$0xff]  ;;  %1917 = vmatprep.subr.bf16.mxu0 %v2517_v5  ;;  %v2525_v15 = vpack.c.bf16 %v42_v12, %v39_v11  ;;  %v45_v17 = vld [vmem:[#allocation3 + $0x60] sm:$0xff]  ;;  %v52_v19 = vld [vmem:[#allocation3 + $0x98] sm:$0xff] }
  0x17   :  { %1919 = vmatpush1.bf16.msra.mxu0 %v2519_v9  ;;  %v2528_v16 = vpack.c.bf16 %v49_v14, %v46_v13  ;;  %v55_v20 = vld [vmem:[#allocation3 + $0xb0] sm:$0xff]  ;;  %v2531_v21 = vpack.c.bf16 %v48_v18, %v45_v17  ;;  %v54_v24 = vld [vmem:[#allocation3 + $0xa8] sm:$0xff]  ;;  %v61_v28 = vld [vmem:[#allocation3 + $0xe0] sm:$0xff] }
  0x18   :  { %1921 = vmatprep.subr.bf16.mxu0 %v2521_v10  ;;  %v51_v22 = vld [vmem:[#allocation3 + $0x90] sm:$0xff]  ;;  %v2534_v23 = vpack.c.bf16 %v55_v20, %v52_v19  ;;  %v38_v26 = vld [vmem:[#allocation3 + $0x28] sm:$0xff]  ;;  %v41_v30 = vld [vmem:[#allocation3 + $0x40] sm:$0xff] }
  0x19   :  { %v35_v25 = vld [vmem:[#allocation3 + $0x10] sm:$0xff]  ;;  %v58_v27 = vld [vmem:[#allocation3 + $0xc8] sm:$0xff]  ;;  %v44_v31 = vld [vmem:[#allocation3 + $0x58] sm:$0xff]  ;;  %v2539_v32 = vpack.c.bf16 %v54_v24, %v51_v22 }
  0x1a   :  { %v2536_v29 = vpack.c.bf16 %v38_v26, %v35_v25  ;;  %v57_v33 = vld [vmem:[#allocation3 + $0xc0] sm:$0xff]  ;;  %v2542_v34 = vpack.c.bf16 %v44_v31, %v41_v30  ;;  %v2545_v35 = vpack.c.bf16 %v61_v28, %v58_v27  ;;  %v60_v36 = vld [vmem:[#allocation3 + $0xd8] sm:$0xff]  ;;  %v47_v37 = vld [vmem:[#allocation3 + $0x70] sm:$0xff] }
  0x1b   :  { %1923 = vmatpush1.bf16.msra.mxu0 %v2525_v15  ;;  %v50_v38 = vld [vmem:[#allocation3 + $0x88] sm:$0xff]  ;;  %v64_v39 = vld [vmem:[#allocation3 + $0xf8] sm:$0xff]  ;;  %v67_v40 = vld [vmem:[#allocation3 + $0x110] sm:$0xff]  ;;  %v2549_v41 = vpack.c.bf16 %v60_v36, %v57_v33 }
  0x1c   :  { %1925 = vmatprep.subr.bf16.mxu0 %v2528_v16  ;;  %1950 = vmatpush3.bf16.msra.mxu1 %v2536_v29  ;;  %v63_v42 = vld [vmem:[#allocation3 + $0xf0] sm:$0xff]  ;;  %v2552_v43 = vpack.c.bf16 %v50_v38, %v47_v37  ;;  %v2555_v44 = vpack.c.bf16 %v67_v40, %v64_v39  ;;  %v66_v45 = vld [vmem:[#allocation3 + $0x108] sm:$0xff]  ;;  %v53_v46 = vld [vmem:[#allocation3 + $0xa0] sm:$0xff] }
  0x1d   :  { %1951 = vmatprep.subr.bf16.mxu1 %v2477_v0  ;;  %v56_v47 = vld [vmem:[#allocation3 + $0xb8] sm:$0xff]  ;;  %v70_v48 = vld [vmem:[#allocation3 + $0x128] sm:$0xff]  ;;  %v73_v49 = vld [vmem:[#allocation3 + $0x140] sm:$0xff]  ;;  %v2559_v50 = vpack.c.bf16 %v66_v45, %v63_v42 }
  0x1e   :  { %v69_v51 = vld [vmem:[#allocation3 + $0x120] sm:$0xff]  ;;  %v2562_v52 = vpack.c.bf16 %v56_v47, %v53_v46  ;;  %v2565_v53 = vpack.c.bf16 %v73_v49, %v70_v48  ;;  %v72_v54 = vld [vmem:[#allocation3 + $0x138] sm:$0xff]  ;;  %v59_v55 = vld [vmem:[#allocation3 + $0xd0] sm:$0xff] }
  0x1f   :  { %1927 = vmatpush1.bf16.msra.mxu0 %v2531_v21  ;;  %v62_v56 = vld [vmem:[#allocation3 + $0xe8] sm:$0xff]  ;;  %v76_v57 = vld [vmem:[#allocation3 + $0x158] sm:$0xff]  ;;  %v79_v58 = vld [vmem:[#allocation3 + $0x170] sm:$0xff]  ;;  %v2569_v59 = vpack.c.bf16 %v72_v54, %v69_v51 }
  0x20   :  { %1929 = vmatprep.subr.bf16.mxu0 %v2534_v23  ;;  %1953 = vmatpush3.bf16.msra.mxu1 %v2542_v34  ;;  %v75_v60 = vld [vmem:[#allocation3 + $0x150] sm:$0xff]  ;;  %v2572_v61 = vpack.c.bf16 %v62_v56, %v59_v55  ;;  %v2575_v62 = vpack.c.bf16 %v79_v58, %v76_v57  ;;  %v78_v63 = vld [vmem:[#allocation3 + $0x168] sm:$0xff]  ;;  %v65_v2 = vld [vmem:[#allocation3 + $0x100] sm:$0xff] }
  0x21   :  { %1954 = vmatprep.subr.bf16.mxu1 %v2477_v0  ;;  %v68_v3 = vld [vmem:[#allocation3 + $0x118] sm:$0xff]  ;;  %v2579_v4 = vpack.c.bf16 %v78_v63, %v75_v60  ;;  %v71_v7 = vld [vmem:[#allocation3 + $0x130] sm:$0xff]  ;;  %v74_v8 = vld [vmem:[#allocation3 + $0x148] sm:$0xff] }
  0x22   :  { %v2582_v6 = vpack.c.bf16 %v68_v3, %v65_v2  ;;  %v2587_v11 = vld [vmem:[#allocation2] sm:$0x3]  ;;  %v2590_v12 = vpack.c.bf16 %v74_v8, %v71_v7  ;;  %v77_v13 = vld [vmem:[#allocation3 + $0x160] sm:$0xff] }
  0x23   :  { %1931 = vmatpush1.bf16.msra.mxu0 %v2539_v32  ;;  %v80_v14 = vld [vmem:[#allocation3 + $0x178] sm:$0xff]  ;;  %v1472_v56 = vld [vmem:[%s2943_s0 + $0x6] sm:$0x3f] }
  0x24   :  { %1933 = vmatprep.subr.bf16.mxu0 %v2545_v35  ;;  %1956 = vmatpush3.bf16.msra.mxu1 %v2552_v43  ;;  %v2596_v17 = vpack.c.bf16 %v80_v14, %v77_v13  ;;  %v230_v18 = vld [vmem:[%s2943_s0] sm:$0x3f]  ;;  %v410_v60 = vrot.slane %v1472_v56, 2 }
  0x25   :  { %1957 = vmatprep.subr.bf16.mxu1 %v2477_v0  ;;  %v239_v20 = vrot.slane %v230_v18, 2  ;;  %v2643_v37 = vld [vmem:[%s2945_s2] ss:$0 sm:$0xff]  ;;  %v250_v40 = vrot.slane %v230_v18, 4 }
  0x27   :  { %1935 = vmatpush1.bf16.msra.mxu0 %v2549_v41 }
  0x28   :  { %1937 = vmatprep.subr.bf16.mxu0 %v2555_v44  ;;  %1959 = vmatpush3.bf16.msra.mxu1 %v2562_v52 }
  0x29   :  { %1960 = vmatprep.subr.bf16.mxu1 %v2477_v0 }
  0x2b   :  { %1939 = vmatpush1.bf16.msra.mxu0 %v2559_v50 }
  0x2c   :  { %1941 = vmatprep.subr.bf16.mxu0 %v2565_v53  ;;  %1962 = vmatpush3.bf16.msra.mxu1 %v2572_v61 }
  0x2d   :  { %1963 = vmatprep.subr.bf16.mxu1 %v2477_v0 }
  0x2f   :  { %1943 = vmatpush1.bf16.msra.mxu0 %v2569_v59 }
  0x30   :  { %1945 = vmatprep.subr.bf16.mxu0 %v2575_v62  ;;  %1965 = vmatpush3.bf16.msra.mxu1 %v2582_v6 }
  0x31   :  { %1966 = vmatprep.subr.bf16.mxu1 %v2477_v0 }
  0x33   :  { %1947 = vmatpush1.bf16.msra.mxu0 %v2579_v4 }
  0x34   :  { %1973 = vmatprep.subr.bf16.mxu0 %v2517_v5  ;;  %1968 = vmatpush3.bf16.msra.mxu1 %v2590_v12 }
  0x35   :  { %1969 = vmatprep.subr.bf16.mxu1 %v2477_v0 }
  0x36   :  { %154 = vmatmul.mubr.f32.vlgmr.msra.gmra.mrb[0].mxu0 %v2587_v11 }
  0x37   :  { %1975 = vmatpush1.bf16.msra.mxu0 %v2519_v9  ;;  %323 = vmatprep.mubr.f32.mxu0 %v2478_v1 }
  0x38   :  { %1977 = vmatprep.subr.bf16.mxu0 %v2521_v10  ;;  %1971 = vmatpush3.bf16.msra.mxu1 %v2596_v17 }
  0x39   :  { %2004 = vmatprep.subr.bf16.mxu1 %v2477_v0 }
  0x3b   :  { %1979 = vmatpush1.bf16.msra.mxu0 %v2525_v15  ;;  %1669 = vmatmul.mubr.f32.vlgmr.msra.gmra.mrb[0].mxu1 %v2587_v11 }
  0x3c   :  { %1981 = vmatprep.subr.bf16.mxu0 %v2528_v16  ;;  %2006 = vmatpush3.bf16.msra.mxu1 %v2536_v29 }
  0x3d   :  { %2007 = vmatprep.subr.bf16.mxu1 %v2477_v0  ;;  %1703 = vmatprep.mubr.msk.f32.mxu1 %vm2479_vm0, %v2478_v1 }
  0x3f   :  { %1983 = vmatpush1.bf16.msra.mxu0 %v2531_v21 }
  0x40   :  { %1985 = vmatprep.subr.bf16.mxu0 %v2534_v23  ;;  %2009 = vmatpush3.bf16.msra.mxu1 %v2542_v34 }
  0x41   :  { %2010 = vmatprep.subr.bf16.mxu1 %v2477_v0 }
  0x43   :  { %1987 = vmatpush1.bf16.msra.mxu0 %v2539_v32 }
  0x44   :  { %1989 = vmatprep.subr.bf16.mxu0 %v2545_v35  ;;  %2012 = vmatpush3.bf16.msra.mxu1 %v2552_v43 }
  0x45   :  { %2013 = vmatprep.subr.bf16.mxu1 %v2477_v0 }
  0x47   :  { %1991 = vmatpush1.bf16.msra.mxu0 %v2549_v41 }
  0x48   :  { %1993 = vmatprep.subr.bf16.mxu0 %v2555_v44  ;;  %2015 = vmatpush3.bf16.msra.mxu1 %v2562_v52 }
  0x49   :  { %2016 = vmatprep.subr.bf16.mxu1 %v2477_v0 }
  0x4b   :  { %1995 = vmatpush1.bf16.msra.mxu0 %v2559_v50 }
  0x4c   :  { %1997 = vmatprep.subr.bf16.mxu0 %v2565_v53  ;;  %2018 = vmatpush3.bf16.msra.mxu1 %v2572_v61 }
  0x4d   :  { %2019 = vmatprep.subr.bf16.mxu1 %v2477_v0 }
  0x4f   :  { %1999 = vmatpush1.bf16.msra.mxu0 %v2569_v59 }
  0x50   :  { %2001 = vmatprep.subr.bf16.mxu0 %v2575_v62  ;;  %2021 = vmatpush3.bf16.msra.mxu1 %v2582_v6 }
  0x51   :  { %2022 = vmatprep.subr.bf16.mxu1 %v2477_v0 }
  0x53   :  { %2003 = vmatpush1.bf16.msra.mxu0 %v2579_v4 }
  0x54   :  { %2029 = vmatprep.subr.bf16.mxu0 %v2517_v5  ;;  %2024 = vmatpush3.bf16.msra.mxu1 %v2590_v12 }
  0x55   :  { %2025 = vmatprep.subr.bf16.mxu1 %v2477_v0 }
  0x58   :  { %2027 = vmatpush3.bf16.msra.mxu1 %v2596_v17 }
  0x59   :  { %2060 = vmatprep.subr.bf16.mxu1 %v2477_v0 }
 0x109   :  { %v155_v19 = vpop.f32.mrb[0].mxu0 }
 0x10a   :  { %v231_v22 = vadd.f32 %v230_v18, %v155_v19  ;;  %v157_v24 = vpop.f32.mrb[1].mxu0 }
 0x10b   :  { %v241_v26 = vadd.f32 %v239_v20, %v157_v24  ;;  %v421_v20 = vrot.slane %v1472_v56, 4 }
 0x10c   :  { %v1470_v25 = vmul.f32 -1.442695, %v231_v22 }
 0x10d   :  { %v1471_v27 = vmul.f32 -1.442695, %v241_v26 }
 0x10e   :  { %2370 = vpow2.f32 %v1470_v25  ;;  %v226_v28 = vpop.f32.mrb[0].mxu1 }
 0x10f   :  { %v1670_v30 = vpop.f32.mrb[1].mxu1  ;;  %2372 = vpow2.f32 %v1471_v27  ;;  %v248_v39 = vadd.f32 %v2643_v37, %v226_v28 }
 0x118   :  { %v2371_v31 = vpop.eup %2370 }
 0x119   :  { %v235_v33 = vadd.f32 1.0, %v2371_v31  ;;  %v2373_v36 = vpop.eup %2372 }
 0x11a   :  { %v245_v38 = vadd.f32 1.0, %v2373_v36 }
 0x11b   :  { %2374 = vrcp.f32 %v235_v33 }
 0x11c   :  { %2376 = vrcp.f32 %v245_v38  ;;  %v1476_v38 = vld [vmem:[%s2943_s0 + $0xc] sm:$0x3f] }
 0x125   :  { %v2375_v42 = vpop.eup %2374 }
 0x126   :  { %v249_v45 = vmul.f32 %v2375_v42, %v248_v39  ;;  %v2377_v47 = vpop.eup %2376  ;;  %v582_v42 = vrot.slane %v1476_v38, 2 }
 0x127   :  { %v254_v48 = vsub.f32 1.0, %v2377_v47  ;;  %v256_v54 = vmul.f32 %v2377_v47, %v2587_v11 }
 0x128   :  { %v252_v46 = vadd.f32 %v250_v40, %v249_v45 }
 0x12a   :  { %2378 = vtanh.f32 %v252_v46 }
 0x134   :  { %v2379_v49 = vpop.eup %2378 }
 0x135   :  { %v255_v51 = vmul.f32 %v2379_v49, %v254_v48 }
 0x137   :  { %v2647_v55 = vadd.f32 %v256_v54, %v255_v51 }
 0x139   :  { %258 = vst [vmem:[%s2946_s3] sm:$0x3] %v2647_v55  ;;  %324 = vmatmul.mubr.f32.vlgmr.msra.gmra.mrb[2].mxu0 %v2647_v55  ;;  %1704 = vmatmul.mubr.f32.vlgmr.msra.gmra.mrb[2].mxu1 %v2647_v55 }
 0x13a   :  { %2031 = vmatpush1.bf16.msra.mxu0 %v2519_v9  ;;  %2062 = vmatpush3.bf16.msra.mxu1 %v2536_v29 }
 0x13b   :  { %2033 = vmatprep.subr.bf16.mxu0 %v2521_v10  ;;  %2063 = vmatprep.subr.bf16.mxu1 %v2477_v0 }
 0x13c   :  { %495 = vmatprep.mubr.f32.mxu0 %v2478_v1  ;;  %1738 = vmatprep.mubr.msk.f32.mxu1 %vm2479_vm0, %v2478_v1 }
 0x13e   :  { %2035 = vmatpush1.bf16.msra.mxu0 %v2525_v15  ;;  %2065 = vmatpush3.bf16.msra.mxu1 %v2542_v34 }
 0x13f   :  { %2037 = vmatprep.subr.bf16.mxu0 %v2528_v16  ;;  %2066 = vmatprep.subr.bf16.mxu1 %v2477_v0 }
 0x142   :  { %2039 = vmatpush1.bf16.msra.mxu0 %v2531_v21  ;;  %2068 = vmatpush3.bf16.msra.mxu1 %v2552_v43 }
 0x143   :  { %2041 = vmatprep.subr.bf16.mxu0 %v2534_v23  ;;  %2069 = vmatprep.subr.bf16.mxu1 %v2477_v0 }
 0x146   :  { %2043 = vmatpush1.bf16.msra.mxu0 %v2539_v32  ;;  %2071 = vmatpush3.bf16.msra.mxu1 %v2562_v52 }
 0x147   :  { %2045 = vmatprep.subr.bf16.mxu0 %v2545_v35  ;;  %2072 = vmatprep.subr.bf16.mxu1 %v2477_v0 }
 0x14a   :  { %2047 = vmatpush1.bf16.msra.mxu0 %v2549_v41  ;;  %2074 = vmatpush3.bf16.msra.mxu1 %v2572_v61 }
 0x14b   :  { %2049 = vmatprep.subr.bf16.mxu0 %v2555_v44  ;;  %2075 = vmatprep.subr.bf16.mxu1 %v2477_v0 }
 0x14e   :  { %2051 = vmatpush1.bf16.msra.mxu0 %v2559_v50  ;;  %2077 = vmatpush3.bf16.msra.mxu1 %v2582_v6 }
 0x14f   :  { %2053 = vmatprep.subr.bf16.mxu0 %v2565_v53  ;;  %2078 = vmatprep.subr.bf16.mxu1 %v2477_v0 }
 0x152   :  { %2055 = vmatpush1.bf16.msra.mxu0 %v2569_v59  ;;  %2080 = vmatpush3.bf16.msra.mxu1 %v2590_v12 }
 0x153   :  { %2057 = vmatprep.subr.bf16.mxu0 %v2575_v62  ;;  %2081 = vmatprep.subr.bf16.mxu1 %v2477_v0 }
 0x156   :  { %2059 = vmatpush1.bf16.msra.mxu0 %v2579_v4  ;;  %2083 = vmatpush3.bf16.msra.mxu1 %v2596_v17 }
 0x157   :  { %2085 = vmatprep.subr.bf16.mxu0 %v2517_v5  ;;  %2116 = vmatprep.subr.bf16.mxu1 %v2477_v0 }
 0x20c   :  { %v325_v57 = vpop.f32.mrb[2].mxu0  ;;  %v396_v58 = vpop.f32.mrb[2].mxu1 }
 0x20d   :  { %v402_v63 = vadd.f32 %v1472_v56, %v325_v57  ;;  %v327_v2 = vpop.f32.mrb[3].mxu0  ;;  %v1705_v3 = vpop.f32.mrb[3].mxu1  ;;  %v419_v22 = vadd.f32 %v2643_v37, %v396_v58  ;;  %v593_v58 = vrot.slane %v1476_v38, 4 }
 0x20e   :  { %v412_v8 = vadd.f32 %v410_v60, %v327_v2 }
 0x20f   :  { %v1473_v7 = vmul.f32 -1.442695, %v402_v63 }
 0x210   :  { %v1474_v11 = vmul.f32 -1.442695, %v412_v8 }
 0x211   :  { %2380 = vpow2.f32 %v1473_v7 }
 0x212   :  { %2382 = vpow2.f32 %v1474_v11 }
 0x21b   :  { %v2381_v13 = vpop.eup %2380 }
 0x21c   :  { %v406_v14 = vadd.f32 1.0, %v2381_v13  ;;  %v2383_v18 = vpop.eup %2382 }
 0x21d   :  { %v416_v19 = vadd.f32 1.0, %v2383_v18 }
 0x21e   :  { %2384 = vrcp.f32 %v406_v14 }
 0x21f   :  { %2386 = vrcp.f32 %v416_v19  ;;  %v1480_v19 = vld [vmem:[%s2943_s0 + $0x12] sm:$0x3f] }
 0x228   :  { %v2385_v24 = vpop.eup %2384 }
 0x229   :  { %v420_v25 = vmul.f32 %v2385_v24, %v419_v22  ;;  %v2387_v27 = vpop.eup %2386  ;;  %v754_v24 = vrot.slane %v1480_v19, 2 }
 0x22a   :  { %v425_v28 = vsub.f32 1.0, %v2387_v27  ;;  %v427_v33 = vmul.f32 %v2387_v27, %v2647_v55 }
 0x22b   :  { %v423_v26 = vadd.f32 %v421_v20, %v420_v25 }
 0x22d   :  { %2388 = vtanh.f32 %v423_v26 }
 0x237   :  { %v2389_v30 = vpop.eup %2388 }
 0x238   :  { %v426_v31 = vmul.f32 %v2389_v30, %v425_v28 }
 0x23a   :  { %v2695_v36 = vadd.f32 %v427_v33, %v426_v31 }
 0x23c   :  { %1475 = vst [vmem:[%s2946_s3 + $0x2] sm:$0x3] %v2695_v36  ;;  %496 = vmatmul.mubr.f32.vlgmr.msra.gmra.mrb[4].mxu0 %v2695_v36  ;;  %1739 = vmatmul.mubr.f32.vlgmr.msra.gmra.mrb[4].mxu1 %v2695_v36 }
 0x23d   :  { %2087 = vmatpush1.bf16.msra.mxu0 %v2519_v9  ;;  %2118 = vmatpush3.bf16.msra.mxu1 %v2536_v29 }
 0x23e   :  { %2089 = vmatprep.subr.bf16.mxu0 %v2521_v10  ;;  %2119 = vmatprep.subr.bf16.mxu1 %v2477_v0 }
 0x23f   :  { %667 = vmatprep.mubr.f32.mxu0 %v2478_v1  ;;  %1773 = vmatprep.mubr.msk.f32.mxu1 %vm2479_vm0, %v2478_v1 }
 0x241   :  { %2091 = vmatpush1.bf16.msra.mxu0 %v2525_v15  ;;  %2121 = vmatpush3.bf16.msra.mxu1 %v2542_v34 }
 0x242   :  { %2093 = vmatprep.subr.bf16.mxu0 %v2528_v16  ;;  %2122 = vmatprep.subr.bf16.mxu1 %v2477_v0 }
 0x245   :  { %2095 = vmatpush1.bf16.msra.mxu0 %v2531_v21  ;;  %2124 = vmatpush3.bf16.msra.mxu1 %v2552_v43 }
 0x246   :  { %2097 = vmatprep.subr.bf16.mxu0 %v2534_v23  ;;  %2125 = vmatprep.subr.bf16.mxu1 %v2477_v0 }
 0x249   :  { %2099 = vmatpush1.bf16.msra.mxu0 %v2539_v32  ;;  %2127 = vmatpush3.bf16.msra.mxu1 %v2562_v52 }
 0x24a   :  { %2101 = vmatprep.subr.bf16.mxu0 %v2545_v35  ;;  %2128 = vmatprep.subr.bf16.mxu1 %v2477_v0 }
 0x24d   :  { %2103 = vmatpush1.bf16.msra.mxu0 %v2549_v41  ;;  %2130 = vmatpush3.bf16.msra.mxu1 %v2572_v61 }
 0x24e   :  { %2105 = vmatprep.subr.bf16.mxu0 %v2555_v44  ;;  %2131 = vmatprep.subr.bf16.mxu1 %v2477_v0 }
 0x251   :  { %2107 = vmatpush1.bf16.msra.mxu0 %v2559_v50  ;;  %2133 = vmatpush3.bf16.msra.mxu1 %v2582_v6 }
 0x252   :  { %2109 = vmatprep.subr.bf16.mxu0 %v2565_v53  ;;  %2134 = vmatprep.subr.bf16.mxu1 %v2477_v0 }
 0x255   :  { %2111 = vmatpush1.bf16.msra.mxu0 %v2569_v59  ;;  %2136 = vmatpush3.bf16.msra.mxu1 %v2590_v12 }
 0x256   :  { %2113 = vmatprep.subr.bf16.mxu0 %v2575_v62  ;;  %2137 = vmatprep.subr.bf16.mxu1 %v2477_v0 }
 0x259   :  { %2115 = vmatpush1.bf16.msra.mxu0 %v2579_v4  ;;  %2139 = vmatpush3.bf16.msra.mxu1 %v2596_v17 }
 0x25a   :  { %2141 = vmatprep.subr.bf16.mxu0 %v2517_v5  ;;  %2172 = vmatprep.subr.bf16.mxu1 %v2477_v0 }
 0x30f   :  { %v497_v39 = vpop.f32.mrb[4].mxu0  ;;  %v568_v40 = vpop.f32.mrb[4].mxu1 }
 0x310   :  { %v574_v45 = vadd.f32 %v1476_v38, %v497_v39  ;;  %v499_v46 = vpop.f32.mrb[5].mxu0  ;;  %v1740_v47 = vpop.f32.mrb[5].mxu1  ;;  %v591_v60 = vadd.f32 %v2643_v37, %v568_v40  ;;  %v765_v40 = vrot.slane %v1480_v19, 4 }
 0x311   :  { %v584_v49 = vadd.f32 %v582_v42, %v499_v46 }
 0x312   :  { %v1477_v48 = vmul.f32 -1.442695, %v574_v45 }
 0x313   :  { %v1478_v51 = vmul.f32 -1.442695, %v584_v49 }
 0x314   :  { %2390 = vpow2.f32 %v1477_v48 }
 0x315   :  { %2392 = vpow2.f32 %v1478_v51 }
 0x31e   :  { %v2391_v54 = vpop.eup %2390 }
 0x31f   :  { %v578_v55 = vadd.f32 1.0, %v2391_v54  ;;  %v2393_v56 = vpop.eup %2392 }
 0x320   :  { %v588_v57 = vadd.f32 1.0, %v2393_v56 }
 0x321   :  { %2394 = vrcp.f32 %v578_v55 }
 0x322   :  { %2396 = vrcp.f32 %v588_v57  ;;  %v1484_v57 = vld [vmem:[%s2943_s0 + $0x18] sm:$0x3f] }
 0x32b   :  { %v2395_v63 = vpop.eup %2394 }
 0x32c   :  { %v592_v2 = vmul.f32 %v2395_v63, %v591_v60  ;;  %v2397_v7 = vpop.eup %2396  ;;  %v926_v63 = vrot.slane %v1484_v57, 2 }
 0x32d   :  { %v597_v8 = vsub.f32 1.0, %v2397_v7  ;;  %v599_v14 = vmul.f32 %v2397_v7, %v2695_v36 }
 0x32e   :  { %v595_v3 = vadd.f32 %v593_v58, %v592_v2 }
 0x330   :  { %2398 = vtanh.f32 %v595_v3 }
 0x33a   :  { %v2399_v11 = vpop.eup %2398 }
 0x33b   :  { %v598_v13 = vmul.f32 %v2399_v11, %v597_v8 }
 0x33d   :  { %v2743_v18 = vadd.f32 %v599_v14, %v598_v13 }
 0x33f   :  { %1479 = vst [vmem:[%s2946_s3 + $0x4] sm:$0x3] %v2743_v18  ;;  %668 = vmatmul.mubr.f32.vlgmr.msra.gmra.mrb[6].mxu0 %v2743_v18  ;;  %1774 = vmatmul.mubr.f32.vlgmr.msra.gmra.mrb[6].mxu1 %v2743_v18 }
 0x340   :  { %2143 = vmatpush1.bf16.msra.mxu0 %v2519_v9  ;;  %2174 = vmatpush3.bf16.msra.mxu1 %v2536_v29 }
 0x341   :  { %2145 = vmatprep.subr.bf16.mxu0 %v2521_v10  ;;  %2175 = vmatprep.subr.bf16.mxu1 %v2477_v0 }
 0x342   :  { %839 = vmatprep.mubr.f32.mxu0 %v2478_v1  ;;  %1808 = vmatprep.mubr.msk.f32.mxu1 %vm2479_vm0, %v2478_v1 }
 0x344   :  { %2147 = vmatpush1.bf16.msra.mxu0 %v2525_v15  ;;  %2177 = vmatpush3.bf16.msra.mxu1 %v2542_v34 }
 0x345   :  { %2149 = vmatprep.subr.bf16.mxu0 %v2528_v16  ;;  %2178 = vmatprep.subr.bf16.mxu1 %v2477_v0 }
 0x348   :  { %2151 = vmatpush1.bf16.msra.mxu0 %v2531_v21  ;;  %2180 = vmatpush3.bf16.msra.mxu1 %v2552_v43 }
 0x349   :  { %2153 = vmatprep.subr.bf16.mxu0 %v2534_v23  ;;  %2181 = vmatprep.subr.bf16.mxu1 %v2477_v0 }
 0x34c   :  { %2155 = vmatpush1.bf16.msra.mxu0 %v2539_v32  ;;  %2183 = vmatpush3.bf16.msra.mxu1 %v2562_v52 }
 0x34d   :  { %2157 = vmatprep.subr.bf16.mxu0 %v2545_v35  ;;  %2184 = vmatprep.subr.bf16.mxu1 %v2477_v0 }
 0x350   :  { %2159 = vmatpush1.bf16.msra.mxu0 %v2549_v41  ;;  %2186 = vmatpush3.bf16.msra.mxu1 %v2572_v61 }
 0x351   :  { %2161 = vmatprep.subr.bf16.mxu0 %v2555_v44  ;;  %2187 = vmatprep.subr.bf16.mxu1 %v2477_v0 }
 0x354   :  { %2163 = vmatpush1.bf16.msra.mxu0 %v2559_v50  ;;  %2189 = vmatpush3.bf16.msra.mxu1 %v2582_v6 }
 0x355   :  { %2165 = vmatprep.subr.bf16.mxu0 %v2565_v53  ;;  %2190 = vmatprep.subr.bf16.mxu1 %v2477_v0 }
 0x358   :  { %2167 = vmatpush1.bf16.msra.mxu0 %v2569_v59  ;;  %2192 = vmatpush3.bf16.msra.mxu1 %v2590_v12 }
 0x359   :  { %2169 = vmatprep.subr.bf16.mxu0 %v2575_v62  ;;  %2193 = vmatprep.subr.bf16.mxu1 %v2477_v0 }
 0x35c   :  { %2171 = vmatpush1.bf16.msra.mxu0 %v2579_v4  ;;  %2195 = vmatpush3.bf16.msra.mxu1 %v2596_v17 }
 0x35d   :  { %2197 = vmatprep.subr.bf16.mxu0 %v2517_v5  ;;  %2228 = vmatprep.subr.bf16.mxu1 %v2477_v0 }
 0x412   :  { %v669_v20 = vpop.f32.mrb[6].mxu0  ;;  %v740_v22 = vpop.f32.mrb[6].mxu1 }
 0x413   :  { %v746_v25 = vadd.f32 %v1480_v19, %v669_v20  ;;  %v671_v26 = vpop.f32.mrb[7].mxu0  ;;  %v1775_v27 = vpop.f32.mrb[7].mxu1  ;;  %v763_v42 = vadd.f32 %v2643_v37, %v740_v22  ;;  %v937_v22 = vrot.slane %v1484_v57, 4 }
 0x414   :  { %v756_v30 = vadd.f32 %v754_v24, %v671_v26 }
 0x415   :  { %v1481_v28 = vmul.f32 -1.442695, %v746_v25 }
 0x416   :  { %v1482_v31 = vmul.f32 -1.442695, %v756_v30 }
 0x417   :  { %2400 = vpow2.f32 %v1481_v28 }
 0x418   :  { %2402 = vpow2.f32 %v1482_v31 }
 0x421   :  { %v2401_v33 = vpop.eup %2400 }
 0x422   :  { %v750_v36 = vadd.f32 1.0, %v2401_v33  ;;  %v2403_v38 = vpop.eup %2402 }
 0x423   :  { %v760_v39 = vadd.f32 1.0, %v2403_v38 }
 0x424   :  { %2404 = vrcp.f32 %v750_v36 }
 0x425   :  { %2406 = vrcp.f32 %v760_v39  ;;  %v1488_v39 = vld [vmem:[%s2943_s0 + $0x1e] sm:$0x3f] }
 0x42e   :  { %v2405_v45 = vpop.eup %2404 }
 0x42f   :  { %v764_v46 = vmul.f32 %v2405_v45, %v763_v42  ;;  %v2407_v48 = vpop.eup %2406  ;;  %v1098_v45 = vrot.slane %v1488_v39, 2 }
 0x430   :  { %v769_v49 = vsub.f32 1.0, %v2407_v48  ;;  %v771_v55 = vmul.f32 %v2407_v48, %v2743_v18 }
 0x431   :  { %v767_v47 = vadd.f32 %v765_v40, %v764_v46 }
 0x433   :  { %2408 = vtanh.f32 %v767_v47 }
 0x43d   :  { %v2409_v51 = vpop.eup %2408 }
 0x43e   :  { %v770_v54 = vmul.f32 %v2409_v51, %v769_v49 }
 0x440   :  { %v2791_v56 = vadd.f32 %v771_v55, %v770_v54 }
 0x442   :  { %1483 = vst [vmem:[%s2946_s3 + $0x6] sm:$0x3] %v2791_v56  ;;  %840 = vmatmul.mubr.f32.vlgmr.msra.gmra.mrb[8].mxu0 %v2791_v56  ;;  %1809 = vmatmul.mubr.f32.vlgmr.msra.gmra.mrb[8].mxu1 %v2791_v56 }
 0x443   :  { %2199 = vmatpush1.bf16.msra.mxu0 %v2519_v9  ;;  %2230 = vmatpush3.bf16.msra.mxu1 %v2536_v29 }
 0x444   :  { %2201 = vmatprep.subr.bf16.mxu0 %v2521_v10  ;;  %2231 = vmatprep.subr.bf16.mxu1 %v2477_v0 }
 0x445   :  { %1011 = vmatprep.mubr.f32.mxu0 %v2478_v1  ;;  %1843 = vmatprep.mubr.msk.f32.mxu1 %vm2479_vm0, %v2478_v1 }
 0x447   :  { %2203 = vmatpush1.bf16.msra.mxu0 %v2525_v15  ;;  %2233 = vmatpush3.bf16.msra.mxu1 %v2542_v34 }
 0x448   :  { %2205 = vmatprep.subr.bf16.mxu0 %v2528_v16  ;;  %2234 = vmatprep.subr.bf16.mxu1 %v2477_v0 }
 0x44b   :  { %2207 = vmatpush1.bf16.msra.mxu0 %v2531_v21  ;;  %2236 = vmatpush3.bf16.msra.mxu1 %v2552_v43 }
 0x44c   :  { %2209 = vmatprep.subr.bf16.mxu0 %v2534_v23  ;;  %2237 = vmatprep.subr.bf16.mxu1 %v2477_v0 }
 0x44f   :  { %2211 = vmatpush1.bf16.msra.mxu0 %v2539_v32  ;;  %2239 = vmatpush3.bf16.msra.mxu1 %v2562_v52 }
 0x450   :  { %2213 = vmatprep.subr.bf16.mxu0 %v2545_v35  ;;  %2240 = vmatprep.subr.bf16.mxu1 %v2477_v0 }
 0x453   :  { %2215 = vmatpush1.bf16.msra.mxu0 %v2549_v41  ;;  %2242 = vmatpush3.bf16.msra.mxu1 %v2572_v61 }
 0x454   :  { %2217 = vmatprep.subr.bf16.mxu0 %v2555_v44  ;;  %2243 = vmatprep.subr.bf16.mxu1 %v2477_v0 }
 0x457   :  { %2219 = vmatpush1.bf16.msra.mxu0 %v2559_v50  ;;  %2245 = vmatpush3.bf16.msra.mxu1 %v2582_v6 }
 0x458   :  { %2221 = vmatprep.subr.bf16.mxu0 %v2565_v53  ;;  %2246 = vmatprep.subr.bf16.mxu1 %v2477_v0 }
 0x45b   :  { %2223 = vmatpush1.bf16.msra.mxu0 %v2569_v59  ;;  %2248 = vmatpush3.bf16.msra.mxu1 %v2590_v12 }
 0x45c   :  { %2225 = vmatprep.subr.bf16.mxu0 %v2575_v62  ;;  %2249 = vmatprep.subr.bf16.mxu1 %v2477_v0 }
 0x45f   :  { %2227 = vmatpush1.bf16.msra.mxu0 %v2579_v4  ;;  %2251 = vmatpush3.bf16.msra.mxu1 %v2596_v17 }
 0x460   :  { %2253 = vmatprep.subr.bf16.mxu0 %v2517_v5  ;;  %2284 = vmatprep.subr.bf16.mxu1 %v2477_v0 }
 0x515   :  { %v841_v58 = vpop.f32.mrb[8].mxu0  ;;  %v912_v60 = vpop.f32.mrb[8].mxu1 }
 0x516   :  { %v918_v2 = vadd.f32 %v1484_v57, %v841_v58  ;;  %v843_v3 = vpop.f32.mrb[9].mxu0  ;;  %v1810_v7 = vpop.f32.mrb[9].mxu1  ;;  %v935_v24 = vadd.f32 %v2643_v37, %v912_v60  ;;  %v1109_v58 = vrot.slane %v1488_v39, 4 }
 0x517   :  { %v928_v11 = vadd.f32 %v926_v63, %v843_v3 }
 0x518   :  { %v1485_v8 = vmul.f32 -1.442695, %v918_v2 }
 0x519   :  { %v1486_v13 = vmul.f32 -1.442695, %v928_v11 }
 0x51a   :  { %2410 = vpow2.f32 %v1485_v8 }
 0x51b   :  { %2412 = vpow2.f32 %v1486_v13 }
 0x524   :  { %v2411_v14 = vpop.eup %2410 }
 0x525   :  { %v922_v18 = vadd.f32 1.0, %v2411_v14  ;;  %v2413_v19 = vpop.eup %2412 }
 0x526   :  { %v932_v20 = vadd.f32 1.0, %v2413_v19  ;;  %v1496_v19 = vld [vmem:[%s2943_s0 + $0x2a] sm:$0x3f] }
 0x527   :  { %2414 = vrcp.f32 %v922_v18 }
 0x528   :  { %2416 = vrcp.f32 %v932_v20 }
 0x531   :  { %v2415_v25 = vpop.eup %2414 }
 0x532   :  { %v936_v26 = vmul.f32 %v2415_v25, %v935_v24  ;;  %v2417_v28 = vpop.eup %2416  ;;  %v1442_v24 = vrot.slane %v1496_v19, 2 }
 0x533   :  { %v941_v30 = vsub.f32 1.0, %v2417_v28  ;;  %v943_v36 = vmul.f32 %v2417_v28, %v2791_v56 }
 0x534   :  { %v939_v27 = vadd.f32 %v937_v22, %v936_v26 }
 0x536   :  { %2418 = vtanh.f32 %v939_v27 }
 0x540   :  { %v2419_v31 = vpop.eup %2418 }
 0x541   :  { %v942_v33 = vmul.f32 %v2419_v31, %v941_v30 }
 0x543   :  { %v2839_v38 = vadd.f32 %v943_v36, %v942_v33 }
 0x545   :  { %1487 = vst [vmem:[%s2946_s3 + $0x8] sm:$0x3] %v2839_v38  ;;  %1012 = vmatmul.mubr.f32.vlgmr.msra.gmra.mrb[10].mxu0 %v2839_v38  ;;  %1844 = vmatmul.mubr.f32.vlgmr.msra.gmra.mrb[10].mxu1 %v2839_v38 }
 0x546   :  { %2255 = vmatpush1.bf16.msra.mxu0 %v2519_v9  ;;  %2286 = vmatpush3.bf16.msra.mxu1 %v2536_v29 }
 0x547   :  { %2257 = vmatprep.subr.bf16.mxu0 %v2521_v10  ;;  %2287 = vmatprep.subr.bf16.mxu1 %v2477_v0 }
 0x548   :  { %1183 = vmatprep.mubr.f32.mxu0 %v2478_v1  ;;  %1878 = vmatprep.mubr.msk.f32.mxu1 %vm2479_vm0, %v2478_v1 }
 0x54a   :  { %2259 = vmatpush1.bf16.msra.mxu0 %v2525_v15  ;;  %2289 = vmatpush3.bf16.msra.mxu1 %v2542_v34 }
 0x54b   :  { %2261 = vmatprep.subr.bf16.mxu0 %v2528_v16  ;;  %2290 = vmatprep.subr.bf16.mxu1 %v2477_v0 }
 0x54e   :  { %2263 = vmatpush1.bf16.msra.mxu0 %v2531_v21  ;;  %2292 = vmatpush3.bf16.msra.mxu1 %v2552_v43 }
 0x54f   :  { %2265 = vmatprep.subr.bf16.mxu0 %v2534_v23  ;;  %2293 = vmatprep.subr.bf16.mxu1 %v2477_v0 }
 0x552   :  { %2267 = vmatpush1.bf16.msra.mxu0 %v2539_v32  ;;  %2295 = vmatpush3.bf16.msra.mxu1 %v2562_v52 }
 0x553   :  { %2269 = vmatprep.subr.bf16.mxu0 %v2545_v35  ;;  %2296 = vmatprep.subr.bf16.mxu1 %v2477_v0 }
 0x556   :  { %2271 = vmatpush1.bf16.msra.mxu0 %v2549_v41  ;;  %2298 = vmatpush3.bf16.msra.mxu1 %v2572_v61 }
 0x557   :  { %2273 = vmatprep.subr.bf16.mxu0 %v2555_v44  ;;  %2299 = vmatprep.subr.bf16.mxu1 %v2477_v0 }
 0x55a   :  { %2275 = vmatpush1.bf16.msra.mxu0 %v2559_v50  ;;  %2301 = vmatpush3.bf16.msra.mxu1 %v2582_v6 }
 0x55b   :  { %2277 = vmatprep.subr.bf16.mxu0 %v2565_v53  ;;  %2302 = vmatprep.subr.bf16.mxu1 %v2477_v0 }
 0x55e   :  { %2279 = vmatpush1.bf16.msra.mxu0 %v2569_v59  ;;  %2304 = vmatpush3.bf16.msra.mxu1 %v2590_v12 }
 0x55f   :  { %2281 = vmatprep.subr.bf16.mxu0 %v2575_v62  ;;  %2305 = vmatprep.subr.bf16.mxu1 %v2477_v0 }
 0x562   :  { %2283 = vmatpush1.bf16.msra.mxu0 %v2579_v4  ;;  %2307 = vmatpush3.bf16.msra.mxu1 %v2596_v17 }
 0x563   :  { %2309 = vmatprep.subr.bf16.mxu0 %v2517_v5  ;;  %2340 = vmatprep.subr.bf16.mxu1 %v2477_v0 }
 0x618   :  { %v1013_v40 = vpop.f32.mrb[10].mxu0  ;;  %v1084_v42 = vpop.f32.mrb[10].mxu1 }
 0x619   :  { %v1090_v46 = vadd.f32 %v1488_v39, %v1013_v40  ;;  %v1015_v47 = vpop.f32.mrb[11].mxu0  ;;  %v1845_v48 = vpop.f32.mrb[11].mxu1  ;;  %v1107_v60 = vadd.f32 %v2643_v37, %v1084_v42  ;;  %v1453_v40 = vrot.slane %v1496_v19, 4 }
 0x61a   :  { %v1100_v51 = vadd.f32 %v1098_v45, %v1015_v47 }
 0x61b   :  { %v1489_v49 = vmul.f32 -1.442695, %v1090_v46 }
 0x61c   :  { %v1490_v54 = vmul.f32 -1.442695, %v1100_v51 }
 0x61d   :  { %2420 = vpow2.f32 %v1489_v49 }
 0x61e   :  { %2422 = vpow2.f32 %v1490_v54 }
 0x627   :  { %v2421_v55 = vpop.eup %2420 }
 0x628   :  { %v1094_v56 = vadd.f32 1.0, %v2421_v55  ;;  %v2423_v5 = vpop.eup %2422 }
 0x629   :  { %v1104_v57 = vadd.f32 1.0, %v2423_v5 }
 0x62a   :  { %2424 = vrcp.f32 %v1094_v56 }
 0x62b   :  { %2426 = vrcp.f32 %v1104_v57 }
 0x634   :  { %v2425_v63 = vpop.eup %2424 }
 0x635   :  { %v1108_v2 = vmul.f32 %v2425_v63, %v1107_v60  ;;  %v2427_v7 = vpop.eup %2426 }
 0x636   :  { %v1113_v8 = vsub.f32 1.0, %v2427_v7  ;;  %v1115_v14 = vmul.f32 %v2427_v7, %v2839_v38 }
 0x637   :  { %v1111_v3 = vadd.f32 %v1109_v58, %v1108_v2 }
 0x639   :  { %2428 = vtanh.f32 %v1111_v3 }
 0x643   :  { %v2429_v11 = vpop.eup %2428 }
 0x644   :  { %v1114_v13 = vmul.f32 %v2429_v11, %v1113_v8 }
 0x646   :  { %v2887_v18 = vadd.f32 %v1115_v14, %v1114_v13 }
 0x648   :  { %1491 = vst [vmem:[%s2946_s3 + $0xa] sm:$0x3] %v2887_v18  ;;  %1184 = vmatmul.mubr.f32.vlgmr.msra.gmra.mrb[12].mxu0 %v2887_v18  ;;  %1879 = vmatmul.mubr.f32.vlgmr.msra.gmra.mrb[12].mxu1 %v2887_v18 }
 0x649   :  { %2311 = vmatpush1.bf16.msra.mxu0 %v2519_v9  ;;  %2342 = vmatpush3.bf16.msra.mxu1 %v2536_v29 }
 0x64a   :  { %2313 = vmatprep.subr.bf16.mxu0 %v2521_v10  ;;  %2343 = vmatprep.subr.bf16.mxu1 %v2477_v0 }
 0x64b   :  { %1355 = vmatprep.mubr.f32.mxu0 %v2478_v1  ;;  %1913 = vmatprep.mubr.msk.f32.mxu1 %vm2479_vm0, %v2478_v1  ;;  %v1492_v1 = vld [vmem:[%s2943_s0 + $0x24] sm:$0x3f] }
 0x64d   :  { %2315 = vmatpush1.bf16.msra.mxu0 %v2525_v15  ;;  %2345 = vmatpush3.bf16.msra.mxu1 %v2542_v34  ;;  %v1270_v15 = vrot.slane %v1492_v1, 2 }
 0x64e   :  { %2317 = vmatprep.subr.bf16.mxu0 %v2528_v16  ;;  %2346 = vmatprep.subr.bf16.mxu1 %v2477_v0 }
 0x651   :  { %2319 = vmatpush1.bf16.msra.mxu0 %v2531_v21  ;;  %2348 = vmatpush3.bf16.msra.mxu1 %v2552_v43 }
 0x652   :  { %2321 = vmatprep.subr.bf16.mxu0 %v2534_v23  ;;  %2349 = vmatprep.subr.bf16.mxu1 %v2477_v0 }
 0x655   :  { %2323 = vmatpush1.bf16.msra.mxu0 %v2539_v32  ;;  %2351 = vmatpush3.bf16.msra.mxu1 %v2562_v52 }
 0x656   :  { %2325 = vmatprep.subr.bf16.mxu0 %v2545_v35  ;;  %2352 = vmatprep.subr.bf16.mxu1 %v2477_v0 }
 0x659   :  { %2327 = vmatpush1.bf16.msra.mxu0 %v2549_v41  ;;  %2354 = vmatpush3.bf16.msra.mxu1 %v2572_v61 }
 0x65a   :  { %2329 = vmatprep.subr.bf16.mxu0 %v2555_v44  ;;  %2355 = vmatprep.subr.bf16.mxu1 %v2477_v0  ;;  %v1281_v44 = vrot.slane %v1492_v1, 4 }
 0x65d   :  { %2331 = vmatpush1.bf16.msra.mxu0 %v2559_v50  ;;  %2357 = vmatpush3.bf16.msra.mxu1 %v2582_v6 }
 0x65e   :  { %2333 = vmatprep.subr.bf16.mxu0 %v2565_v53  ;;  %2358 = vmatprep.subr.bf16.mxu1 %v2477_v0 }
 0x661   :  { %2335 = vmatpush1.bf16.msra.mxu0 %v2569_v59  ;;  %2360 = vmatpush3.bf16.msra.mxu1 %v2590_v12 }
 0x662   :  { %2337 = vmatprep.subr.bf16.mxu0 %v2575_v62  ;;  %2361 = vmatprep.subr.bf16.mxu1 %v2477_v0 }
 0x665   :  { %2339 = vmatpush1.bf16.msra.mxu0 %v2579_v4  ;;  %2363 = vmatpush3.bf16.msra.mxu1 %v2596_v17 }
 0x71b   :  { %v1185_v9 = vpop.f32.mrb[12].mxu0  ;;  %v1256_v10 = vpop.f32.mrb[12].mxu1 }
 0x71c   :  { %v1262_v16 = vadd.f32 %v1492_v1, %v1185_v9  ;;  %v1187_v21 = vpop.f32.mrb[13].mxu0  ;;  %v1880_v23 = vpop.f32.mrb[13].mxu1  ;;  %v1279_v50 = vadd.f32 %v2643_v37, %v1256_v10 }
 0x71d   :  { %v1272_v32 = vadd.f32 %v1270_v15, %v1187_v21 }
 0x71e   :  { %v1493_v29 = vmul.f32 -1.442695, %v1262_v16 }
 0x71f   :  { %v1494_v34 = vmul.f32 -1.442695, %v1272_v32 }
 0x720   :  { %2430 = vpow2.f32 %v1493_v29 }
 0x721   :  { %2432 = vpow2.f32 %v1494_v34 }
 0x72a   :  { %v2431_v0 = vpop.eup %2430 }
 0x72b   :  { %v1266_v35 = vadd.f32 1.0, %v2431_v0  ;;  %v2433_v41 = vpop.eup %2432 }
 0x72c   :  { %v1276_v43 = vadd.f32 1.0, %v2433_v41 }
 0x72d   :  { %2434 = vrcp.f32 %v1266_v35 }
 0x72e   :  { %2436 = vrcp.f32 %v1276_v43 }
 0x737   :  { %v2435_v52 = vpop.eup %2434 }
 0x738   :  { %v1280_v53 = vmul.f32 %v2435_v52, %v1279_v50  ;;  %v2437_v61 = vpop.eup %2436 }
 0x739   :  { %v1285_v62 = vsub.f32 1.0, %v2437_v61  ;;  %v1287_v12 = vmul.f32 %v2437_v61, %v2887_v18 }
 0x73a   :  { %v1283_v59 = vadd.f32 %v1281_v44, %v1280_v53 }
 0x73c   :  { %2438 = vtanh.f32 %v1283_v59 }
 0x746   :  { %v2439_v4 = vpop.eup %2438 }
 0x747   :  { %v1286_v6 = vmul.f32 %v2439_v4, %v1285_v62 }
 0x749   :  { %v1288_v17 = vadd.f32 %v1287_v12, %v1286_v6 }
 0x74b   :  { %1495 = vst [vmem:[%s2946_s3 + $0xc] sm:$0x3] %v1288_v17  ;;  %1356 = vmatmul.mubr.f32.vlgmr.msra.gmra.mrb[14].mxu0 %v1288_v17  ;;  %1914 = vmatmul.mubr.f32.vlgmr.msra.gmra.mrb[14].mxu1 %v1288_v17 }
 0x81e   :  { %v1357_v20 = vpop.f32.mrb[14].mxu0  ;;  %v1428_v22 = vpop.f32.mrb[14].mxu1 }
 0x81f   :  { %v1434_v25 = vadd.f32 %v1496_v19, %v1357_v20  ;;  %v1359_v26 = vpop.f32.mrb[15].mxu0  ;;  %v1915_v27 = vpop.f32.mrb[15].mxu1  ;;  %v1451_v42 = vadd.f32 %v2643_v37, %v1428_v22 }
 0x820   :  { %v1444_v30 = vadd.f32 %v1442_v24, %v1359_v26 }
 0x821   :  { %v1497_v28 = vmul.f32 -1.442695, %v1434_v25 }
 0x822   :  { %v1498_v31 = vmul.f32 -1.442695, %v1444_v30 }
 0x823   :  { %2440 = vpow2.f32 %v1497_v28 }
 0x824   :  { %2442 = vpow2.f32 %v1498_v31 }
 0x82d   :  { %v2441_v33 = vpop.eup %2440 }
 0x82e   :  { %v1438_v36 = vadd.f32 1.0, %v2441_v33  ;;  %v2443_v38 = vpop.eup %2442 }
 0x82f   :  { %v1448_v39 = vadd.f32 1.0, %v2443_v38 }
 0x830   :  { %2444 = vrcp.f32 %v1438_v36 }
 0x831   :  { %2446 = vrcp.f32 %v1448_v39 }
 0x83a   :  { %v2445_v45 = vpop.eup %2444 }
 0x83b   :  { %v1452_v46 = vmul.f32 %v2445_v45, %v1451_v42  ;;  %v2447_v48 = vpop.eup %2446 }
 0x83c   :  { %v1457_v49 = vsub.f32 1.0, %v2447_v48  ;;  %v1459_v55 = vmul.f32 %v2447_v48, %v1288_v17 }
 0x83d   :  { %v1455_v47 = vadd.f32 %v1453_v40, %v1452_v46 }
 0x83f   :  { %2448 = vtanh.f32 %v1455_v47 }
 0x849   :  { %v2449_v51 = vpop.eup %2448 }
 0x84a   :  { %v1458_v54 = vmul.f32 %v2449_v51, %v1457_v49 }
 0x84c   :  { %v1460_v56 = vadd.f32 %v1459_v55, %v1458_v54 }
 0x84e   :  { %1499 = vst [vmem:[%s2946_s3 + $0xe] sm:$0x3] %v1460_v56  ;;  %1463 = vst [vmem:[#allocation2] sm:$0x3] %v1460_v56 }
 0x84f   :  { %1468 = vsyncpa [#allocation4], 1 }

</bundles_post_ra>
